<compile_context>
chip_gen: v5e
topology: v5e:2x2
jax: 0.10.0
libtpu: 0.0.40
codegen_flags: <defaults>
</compile_context>

<pallas_src>
import functools

import numpy as np
import jax
import jax.numpy as jnp
from jax import lax
from jax.experimental import pallas as pl
from jax.experimental.pallas import tpu as pltpu


# ------------------------------------------------------------------ fused kernel
def _recovery_fused_kernel(x_ref, mask_ref, wc_ref, bc_ref, w1_ref, b1_ref,
                           w2_ref, b2_ref, w3_ref, b3_ref, o_ref,
                           patches_scr, feat_scr, *, H, W, Cin_p, Cout, TB):
    """One batch tile (TB elements) per grid step.

    x_ref    : (TB, Cin_p, HW)      flattened NCHW input (channel-padded)
    mask_ref : (9, HW)              precomputed halo-validity mask per 3x3 tap
    wc_ref   : (Cout, 9*Cin_p)      conv weights, tap-major / channel-minor
    bc_ref   : (Cout, 1)            conv bias
    w1_ref   : (Cout*HW, 64)        fc1 weights (torch NCHW-flatten order)
    b1_ref   : (1, 64)   w2_ref : (64, 32)   b2_ref : (1, 32)
    w3_ref   : (32, 1)   b3_ref : (1, 1)
    o_ref    : (1, TB, 1)
    patches_scr : VMEM (TB, 9*Cin_p, HW)   im2col patches
    feat_scr    : VMEM (TB, Cout*HW)       conv+ReLU activation, NCHW-flattened per row
    """
    HW = H * W
    K9 = 9 * Cin_p
    x = x_ref[...]                                                  # (TB, Cin_p, HW)

    # ---- im2col into VMEM scratch: XLU lane rolls + precomputed halo masks ----
    t = 0
    for dh in (-1, 0, 1):
        for dw in (-1, 0, 1):
            delta = dh * W + dw
            lo = t * Cin_p
            if delta == 0:
                patches_scr[:, lo:lo + Cin_p, :] = x                # centre tap: no mask
            else:
                # rolled[..., q] = x[..., (q + delta) % HW]; wrap positions are zeroed
                # by the halo mask, so only in-image neighbours survive.
                rolled = pltpu.roll(x, shift=(-delta) % HW, axis=2)
                patches_scr[:, lo:lo + Cin_p, :] = rolled * mask_ref[t]
            t += 1

    # ---- conv: single batched MXU contraction over K = 9*Cin_p ----
    wc_b = jnp.broadcast_to(wc_ref[...][None], (TB, Cout, K9))      # hoisted, once
    feat = jnp.einsum("bok,bkh->boh", wc_b, patches_scr[...],
                      preferred_element_type=jnp.float32)           # (TB, Cout, HW)
    feat = jnp.maximum(feat + bc_ref[...], 0.0)

    # ---- regroup to torch NCHW-flatten order: lane-aligned slab stores, so fc1 is
    #      ONE K = Cout*HW matmul instead of a Cout-unrolled loop of tiny matmuls ----
    for c in range(Cout):
        feat_scr[:, c * HW:(c + 1) * HW] = feat[:, c, :]

    # ---- MLP head, activation never leaves VMEM ----
    h = jnp.dot(feat_scr[...], w1_ref[...], preferred_element_type=jnp.float32)
    h = jnp.maximum(h + b1_ref[...], 0.0)                           # (TB, 64)
    h = jnp.maximum(jnp.dot(h, w2_ref[...], preferred_element_type=jnp.float32)
                    + b2_ref[...], 0.0)                             # (TB, 32)
    y = jnp.dot(h, w3_ref[...], preferred_element_type=jnp.float32) + b3_ref[...]
    o_ref[...] = y[None]                                            # (1, TB, 1)


# ----------------------------------------------------------------------- wrapper
def recovery_model_forward(x_nchw, params, *, batch_tile=64):
    """Matches RecoveryModel.forward: conv->relu->flatten(NCHW)->fc->squeeze."""
    B, Cin, H, W = x_nchw.shape
    HW = H * W
    conv_w = params["conv_w"]                       # (Cout, Cin, 3, 3) torch OIHW
    Cout = conv_w.shape[0]
    F = Cout * HW

    # ---- weight layout plumbing (cheap, wrapper side) ----
    Cin_p = ((Cin + 7) // 8) * 8                    # pad channels to sublane multiple
    wt = jnp.transpose(conv_w, (0, 2, 3, 1))        # (Cout, kh, kw, Cin)
    if Cin_p != Cin:
        wt = jnp.pad(wt, ((0, 0), (0, 0), (0, 0), (0, Cin_p - Cin)))
    wc = wt.reshape(Cout, 9 * Cin_p)
    bc = params["conv_b"].reshape(Cout, 1)
    w1 = params["w1"]                               # (F, 64), torch-flatten (c,h,w) order
    b1 = params["b1"].reshape(1, 64)
    w2 = params["w2"]
    b2 = params["b2"].reshape(1, 32)
    w3 = params["w3"]
    b3 = params["b3"].reshape(1, 1)

    # ---- precomputed halo-validity masks, one (HW,) row per 3x3 tap ----
    hw_idx = np.arange(HW)
    rows, cols = hw_idx // W, hw_idx % W
    mask_np = np.stack([((rows + dh >= 0) & (rows + dh < H) &
                         (cols + dw >= 0) & (cols + dw < W)).astype(np.float32)
                        for dh in (-1, 0, 1) for dw in (-1, 0, 1)])
    masks = jnp.asarray(mask_np)                    # (9, HW)

    # ---- batch tiling: >= 2 "parallel" grid steps when B >= 2 (v7x: 2 TensorCores) ----
    TB = max(1, min(batch_tile, (B + 1) // 2))
    G = (B + TB - 1) // TB
    Bp = G * TB

    x3 = x_nchw.reshape(B, Cin, HW)
    if Cin_p != Cin:
        x3 = jnp.pad(x3, ((0, 0), (0, Cin_p - Cin), (0, 0)))
    if Bp != B:
        x3 = jnp.pad(x3, ((0, Bp - B), (0, 0), (0, 0)))

    kernel = functools.partial(_recovery_fused_kernel,
                               H=H, W=W, Cin_p=Cin_p, Cout=Cout, TB=TB)
    out = pl.pallas_call(
        kernel,
        out_shape=jax.ShapeDtypeStruct((G, TB, 1), jnp.float32),
        grid_spec=pltpu.PrefetchScalarGridSpec(
            num_scalar_prefetch=0,
            grid=(G,),
            in_specs=[
                pl.BlockSpec((TB, Cin_p, HW), lambda i: (i, 0, 0)),     # x
                pl.BlockSpec((9, HW), lambda i: (0, 0)),                # halo masks
                pl.BlockSpec((Cout, 9 * Cin_p), lambda i: (0, 0)),      # conv w
                pl.BlockSpec((Cout, 1), lambda i: (0, 0)),              # conv b
                pl.BlockSpec((F, 64), lambda i: (0, 0)),                # fc1 w
                pl.BlockSpec((1, 64), lambda i: (0, 0)),                # fc1 b
                pl.BlockSpec((64, 32), lambda i: (0, 0)),               # fc2 w
                pl.BlockSpec((1, 32), lambda i: (0, 0)),                # fc2 b
                pl.BlockSpec((32, 1), lambda i: (0, 0)),                # fc3 w
                pl.BlockSpec((1, 1), lambda i: (0, 0)),                 # fc3 b
            ],
            out_specs=pl.BlockSpec((1, TB, 1), lambda i: (i, 0, 0)),
            scratch_shapes=[
                pltpu.VMEM((TB, 9 * Cin_p, HW), jnp.float32),           # im2col patches
                pltpu.VMEM((TB, F), jnp.float32),                       # flattened feat
            ],
        ),
        compiler_params=pltpu.CompilerParams(dimension_semantics=("parallel",)),
    )(x3, masks, wc, bc, w1, b1, w2, b2, w3, b3)

    # torch's .squeeze(): (B,) for B > 1, scalar for B == 1
    return jnp.squeeze(out.reshape(Bp)[:B])


# ------------------------------------------------------------------------ params
def init_params(key, Cin, Cout, H, W):
    F = Cout * H * W
    ks = jax.random.split(key, 8)
    return {
        "conv_w": jax.random.normal(ks[0], (Cout, Cin, 3, 3), jnp.float32) * 0.05,
        "conv_b": jax.random.normal(ks[1], (Cout,), jnp.float32) * 0.05,
        "w1": jax.random.normal(ks[2], (F, 64), jnp.float32) * 0.01,
        "b1": jax.random.normal(ks[3], (64,), jnp.float32) * 0.01,
        "w2": jax.random.normal(ks[4], (64, 32), jnp.float32) * 0.05,
        "b2": jax.random.normal(ks[5], (32,), jnp.float32) * 0.05,
        "w3": jax.random.normal(ks[6], (32, 1), jnp.float32) * 0.05,
        "b3": jax.random.normal(ks[7], (1,), jnp.float32) * 0.05,
    }


def reference_forward(x_nchw, params):
    """Pure-JAX reference for correctness checking."""
    y = lax.conv_general_dilated(
        x_nchw, params["conv_w"], window_strides=(1, 1), padding="SAME",
        dimension_numbers=("NCHW", "OIHW", "NCHW"))
    y = jnp.maximum(y + params["conv_b"][None, :, None, None], 0.0)
    feat = y.reshape(y.shape[0], -1)
    h = jnp.maximum(feat @ params["w1"] + params["b1"], 0.0)
    h = jnp.maximum(h @ params["w2"] + params["b2"], 0.0)
    return jnp.squeeze(h @ params["w3"] + params["b3"])


if __name__ == "__main__":
    B, Cin, H, W, Cout = 2, 7, 16, 16, 16
    key = jax.random.PRNGKey(0)
    k_x, k_p = jax.random.split(key)
    x = jax.random.normal(k_x, (B, Cin, H, W), jnp.float32)
    params = init_params(k_p, Cin, Cout, H, W)

    out = jax.block_until_ready(recovery_model_forward(x, params))
    ref = reference_forward(x, params)
    assert out.shape == ref.shape, (out.shape, ref.shape)
    assert jnp.allclose(out, ref, atol=1e-3, rtol=1e-3), (out, ref)

    print("KERNEL_OK")
</pallas_src>

<mosaic_0001>
module attributes {stable_mosaic.version = 11 : i64} {
  func.func @_recovery_fused_kernel(%arg0: i32, %arg1: memref<1x8x256xf32, #tpu.memory_space<vmem>>, %arg2: memref<9x256xf32, #tpu.memory_space<vmem>>, %arg3: memref<16x72xf32, #tpu.memory_space<vmem>>, %arg4: memref<16x1xf32, #tpu.memory_space<vmem>>, %arg5: memref<4096x64xf32, #tpu.memory_space<vmem>>, %arg6: memref<1x64xf32, #tpu.memory_space<vmem>>, %arg7: memref<64x32xf32, #tpu.memory_space<vmem>>, %arg8: memref<1x32xf32, #tpu.memory_space<vmem>>, %arg9: memref<32x1xf32, #tpu.memory_space<vmem>>, %arg10: memref<1x1xf32, #tpu.memory_space<vmem>>, %arg11: memref<1x1x1xf32, #tpu.memory_space<vmem>>, %arg12: memref<1x72x256xf32, #tpu.memory_space<vmem>>, %arg13: memref<1x4096xf32, #tpu.memory_space<vmem>>) attributes {dimension_semantics = [#tpu.dimension_semantics<parallel>], iteration_bounds = array<i64: 2>, scalar_prefetch = 0 : i64, scratch_operands = 2 : i64, tpu.core_type = #tpu.core_type<tc>, window_params = [{transform_indices = @transform_0, window_bounds = array<i64: 1, 8, 256>}, {pipeline_mode = #tpu.pipeline_mode<synchronous>, transform_indices = @transform_1, window_bounds = array<i64: 9, 256>}, {pipeline_mode = #tpu.pipeline_mode<synchronous>, transform_indices = @transform_2, window_bounds = array<i64: 16, 72>}, {pipeline_mode = #tpu.pipeline_mode<synchronous>, transform_indices = @transform_3, window_bounds = array<i64: 16, 1>}, {pipeline_mode = #tpu.pipeline_mode<synchronous>, transform_indices = @transform_4, window_bounds = array<i64: 4096, 64>}, {pipeline_mode = #tpu.pipeline_mode<synchronous>, transform_indices = @transform_5, window_bounds = array<i64: 1, 64>}, {pipeline_mode = #tpu.pipeline_mode<synchronous>, transform_indices = @transform_6, window_bounds = array<i64: 64, 32>}, {pipeline_mode = #tpu.pipeline_mode<synchronous>, transform_indices = @transform_7, window_bounds = array<i64: 1, 32>}, {pipeline_mode = #tpu.pipeline_mode<synchronous>, transform_indices = @transform_8, window_bounds = array<i64: 32, 1>}, {pipeline_mode = #tpu.pipeline_mode<synchronous>, transform_indices = @transform_9, window_bounds = array<i64: 1, 1>}, {transform_indices = @transform_10, window_bounds = array<i64: 1, 1, 1>}]} {
    %c0 = arith.constant 0 : index
    %c0_0 = arith.constant 0 : index
    %c0_1 = arith.constant 0 : index
    %0 = vector.load %arg1[%c0, %c0_0, %c0_1] : memref<1x8x256xf32, #tpu.memory_space<vmem>>, vector<1x8x256xf32>
    %c17_i32 = arith.constant 17 : i32
    %1 = tpu.dynamic_rotate %0 by %c17_i32 dim 2 : vector<1x8x256xf32>, i32 -> vector<1x8x256xf32>
    %c0_2 = arith.constant 0 : index
    %c0_3 = arith.constant 0 : index
    %2 = vector.load %arg2[%c0_2, %c0_3] : memref<9x256xf32, #tpu.memory_space<vmem>>, vector<1x256xf32>
    %3 = vector.shape_cast %2 : vector<1x256xf32> to vector<256xf32>
    %4 = vector.shape_cast %3 : vector<256xf32> to vector<1x1x256xf32>
    %5 = vector.broadcast %4 : vector<1x1x256xf32> to vector<1x8x256xf32>
    %6 = arith.mulf %1, %5 : vector<1x8x256xf32>
    %c0_4 = arith.constant 0 : index
    %c0_5 = arith.constant 0 : index
    %c0_6 = arith.constant 0 : index
    %7 = vector.load %arg12[%c0_4, %c0_5, %c0_6] : memref<1x72x256xf32, #tpu.memory_space<vmem>>, vector<1x8x256xf32>
    tpu.vector_store %arg12[%c0_4, %c0_5, %c0_6], %6 {strides = array<i32>} : memref<1x72x256xf32, #tpu.memory_space<vmem>>, vector<1x8x256xf32>,
    %c16_i32 = arith.constant 16 : i32
    %8 = tpu.dynamic_rotate %0 by %c16_i32 dim 2 : vector<1x8x256xf32>, i32 -> vector<1x8x256xf32>
    %c1 = arith.constant 1 : index
    %c0_7 = arith.constant 0 : index
    %9 = vector.load %arg2[%c1, %c0_7] : memref<9x256xf32, #tpu.memory_space<vmem>>, vector<1x256xf32>
    %10 = vector.shape_cast %9 : vector<1x256xf32> to vector<256xf32>
    %11 = vector.shape_cast %10 : vector<256xf32> to vector<1x1x256xf32>
    %12 = vector.broadcast %11 : vector<1x1x256xf32> to vector<1x8x256xf32>
    %13 = arith.mulf %8, %12 : vector<1x8x256xf32>
    %c0_8 = arith.constant 0 : index
    %c8 = arith.constant 8 : index
    %c0_9 = arith.constant 0 : index
    %14 = vector.load %arg12[%c0_8, %c8, %c0_9] : memref<1x72x256xf32, #tpu.memory_space<vmem>>, vector<1x8x256xf32>
    tpu.vector_store %arg12[%c0_8, %c8, %c0_9], %13 {strides = array<i32>} : memref<1x72x256xf32, #tpu.memory_space<vmem>>, vector<1x8x256xf32>,
    %c15_i32 = arith.constant 15 : i32
    %15 = tpu.dynamic_rotate %0 by %c15_i32 dim 2 : vector<1x8x256xf32>, i32 -> vector<1x8x256xf32>
    %c2 = arith.constant 2 : index
    %c0_10 = arith.constant 0 : index
    %16 = vector.load %arg2[%c2, %c0_10] : memref<9x256xf32, #tpu.memory_space<vmem>>, vector<1x256xf32>
    %17 = vector.shape_cast %16 : vector<1x256xf32> to vector<256xf32>
    %18 = vector.shape_cast %17 : vector<256xf32> to vector<1x1x256xf32>
    %19 = vector.broadcast %18 : vector<1x1x256xf32> to vector<1x8x256xf32>
    %20 = arith.mulf %15, %19 : vector<1x8x256xf32>
    %c0_11 = arith.constant 0 : index
    %c16 = arith.constant 16 : index
    %c0_12 = arith.constant 0 : index
    %21 = vector.load %arg12[%c0_11, %c16, %c0_12] : memref<1x72x256xf32, #tpu.memory_space<vmem>>, vector<1x8x256xf32>
    tpu.vector_store %arg12[%c0_11, %c16, %c0_12], %20 {strides = array<i32>} : memref<1x72x256xf32, #tpu.memory_space<vmem>>, vector<1x8x256xf32>,
    %c1_i32 = arith.constant 1 : i32
    %22 = tpu.dynamic_rotate %0 by %c1_i32 dim 2 : vector<1x8x256xf32>, i32 -> vector<1x8x256xf32>
    %c3 = arith.constant 3 : index
    %c0_13 = arith.constant 0 : index
    %23 = vector.load %arg2[%c3, %c0_13] : memref<9x256xf32, #tpu.memory_space<vmem>>, vector<1x256xf32>
    %24 = vector.shape_cast %23 : vector<1x256xf32> to vector<256xf32>
    %25 = vector.shape_cast %24 : vector<256xf32> to vector<1x1x256xf32>
    %26 = vector.broadcast %25 : vector<1x1x256xf32> to vector<1x8x256xf32>
    %27 = arith.mulf %22, %26 : vector<1x8x256xf32>
    %c0_14 = arith.constant 0 : index
    %c24 = arith.constant 24 : index
    %c0_15 = arith.constant 0 : index
    %28 = vector.load %arg12[%c0_14, %c24, %c0_15] : memref<1x72x256xf32, #tpu.memory_space<vmem>>, vector<1x8x256xf32>
    tpu.vector_store %arg12[%c0_14, %c24, %c0_15], %27 {strides = array<i32>} : memref<1x72x256xf32, #tpu.memory_space<vmem>>, vector<1x8x256xf32>,
    %c0_16 = arith.constant 0 : index
    %c32 = arith.constant 32 : index
    %c0_17 = arith.constant 0 : index
    %29 = vector.load %arg12[%c0_16, %c32, %c0_17] : memref<1x72x256xf32, #tpu.memory_space<vmem>>, vector<1x8x256xf32>
    tpu.vector_store %arg12[%c0_16, %c32, %c0_17], %0 {strides = array<i32>} : memref<1x72x256xf32, #tpu.memory_space<vmem>>, vector<1x8x256xf32>,
    %c255_i32 = arith.constant 255 : i32
    %30 = tpu.dynamic_rotate %0 by %c255_i32 dim 2 : vector<1x8x256xf32>, i32 -> vector<1x8x256xf32>
    %c5 = arith.constant 5 : index
    %c0_18 = arith.constant 0 : index
    %31 = vector.load %arg2[%c5, %c0_18] : memref<9x256xf32, #tpu.memory_space<vmem>>, vector<1x256xf32>
    %32 = vector.shape_cast %31 : vector<1x256xf32> to vector<256xf32>
    %33 = vector.shape_cast %32 : vector<256xf32> to vector<1x1x256xf32>
    %34 = vector.broadcast %33 : vector<1x1x256xf32> to vector<1x8x256xf32>
    %35 = arith.mulf %30, %34 : vector<1x8x256xf32>
    %c0_19 = arith.constant 0 : index
    %c40 = arith.constant 40 : index
    %c0_20 = arith.constant 0 : index
    %36 = vector.load %arg12[%c0_19, %c40, %c0_20] : memref<1x72x256xf32, #tpu.memory_space<vmem>>, vector<1x8x256xf32>
    tpu.vector_store %arg12[%c0_19, %c40, %c0_20], %35 {strides = array<i32>} : memref<1x72x256xf32, #tpu.memory_space<vmem>>, vector<1x8x256xf32>,
    %c241_i32 = arith.constant 241 : i32
    %37 = tpu.dynamic_rotate %0 by %c241_i32 dim 2 : vector<1x8x256xf32>, i32 -> vector<1x8x256xf32>
    %c6 = arith.constant 6 : index
    %c0_21 = arith.constant 0 : index
    %38 = vector.load %arg2[%c6, %c0_21] : memref<9x256xf32, #tpu.memory_space<vmem>>, vector<1x256xf32>
    %39 = vector.shape_cast %38 : vector<1x256xf32> to vector<256xf32>
    %40 = vector.shape_cast %39 : vector<256xf32> to vector<1x1x256xf32>
    %41 = vector.broadcast %40 : vector<1x1x256xf32> to vector<1x8x256xf32>
    %42 = arith.mulf %37, %41 : vector<1x8x256xf32>
    %c0_22 = arith.constant 0 : index
    %c48 = arith.constant 48 : index
    %c0_23 = arith.constant 0 : index
    %43 = vector.load %arg12[%c0_22, %c48, %c0_23] : memref<1x72x256xf32, #tpu.memory_space<vmem>>, vector<1x8x256xf32>
    tpu.vector_store %arg12[%c0_22, %c48, %c0_23], %42 {strides = array<i32>} : memref<1x72x256xf32, #tpu.memory_space<vmem>>, vector<1x8x256xf32>,
    %c240_i32 = arith.constant 240 : i32
    %44 = tpu.dynamic_rotate %0 by %c240_i32 dim 2 : vector<1x8x256xf32>, i32 -> vector<1x8x256xf32>
    %c7 = arith.constant 7 : index
    %c0_24 = arith.constant 0 : index
    %45 = vector.load %arg2[%c7, %c0_24] : memref<9x256xf32, #tpu.memory_space<vmem>>, vector<1x256xf32>
    %46 = vector.shape_cast %45 : vector<1x256xf32> to vector<256xf32>
    %47 = vector.shape_cast %46 : vector<256xf32> to vector<1x1x256xf32>
    %48 = vector.broadcast %47 : vector<1x1x256xf32> to vector<1x8x256xf32>
    %49 = arith.mulf %44, %48 : vector<1x8x256xf32>
    %c0_25 = arith.constant 0 : index
    %c56 = arith.constant 56 : index
    %c0_26 = arith.constant 0 : index
    %50 = vector.load %arg12[%c0_25, %c56, %c0_26] : memref<1x72x256xf32, #tpu.memory_space<vmem>>, vector<1x8x256xf32>
    tpu.vector_store %arg12[%c0_25, %c56, %c0_26], %49 {strides = array<i32>} : memref<1x72x256xf32, #tpu.memory_space<vmem>>, vector<1x8x256xf32>,
    %c239_i32 = arith.constant 239 : i32
    %51 = tpu.dynamic_rotate %0 by %c239_i32 dim 2 : vector<1x8x256xf32>, i32 -> vector<1x8x256xf32>
    %c8_27 = arith.constant 8 : index
    %c0_28 = arith.constant 0 : index
    %52 = vector.load %arg2[%c8_27, %c0_28] : memref<9x256xf32, #tpu.memory_space<vmem>>, vector<1x256xf32>
    %53 = vector.shape_cast %52 : vector<1x256xf32> to vector<256xf32>
    %54 = vector.shape_cast %53 : vector<256xf32> to vector<1x1x256xf32>
    %55 = vector.broadcast %54 : vector<1x1x256xf32> to vector<1x8x256xf32>
    %56 = arith.mulf %51, %55 : vector<1x8x256xf32>
    %c0_29 = arith.constant 0 : index
    %c64 = arith.constant 64 : index
    %c0_30 = arith.constant 0 : index
    %57 = vector.load %arg12[%c0_29, %c64, %c0_30] : memref<1x72x256xf32, #tpu.memory_space<vmem>>, vector<1x8x256xf32>
    tpu.vector_store %arg12[%c0_29, %c64, %c0_30], %56 {strides = array<i32>} : memref<1x72x256xf32, #tpu.memory_space<vmem>>, vector<1x8x256xf32>,
    %c0_31 = arith.constant 0 : index
    %c0_32 = arith.constant 0 : index
    %58 = vector.load %arg3[%c0_31, %c0_32] : memref<16x72xf32, #tpu.memory_space<vmem>>, vector<16x72xf32>
    %59 = vector.shape_cast %58 : vector<16x72xf32> to vector<1x16x72xf32>
    %c0_33 = arith.constant 0 : index
    %c0_34 = arith.constant 0 : index
    %c0_35 = arith.constant 0 : index
    %60 = vector.load %arg12[%c0_33, %c0_34, %c0_35] : memref<1x72x256xf32, #tpu.memory_space<vmem>>, vector<1x72x256xf32>
    "tpu.trace_start"() <{level = 10 : i32, message = "bok,bkh->boh"}> : () -> ()
    %cst = arith.constant dense<0.000000e+00> : vector<1x16x256xf32>
    %61 = tpu.matmul %59, %60, %cst {dimension_numbers = #tpu.dot_dimension_numbers<[2], [1], [1], [2], [0, 0, 0, 1, 1, 2], [0], [0]>} : vector<1x16x72xf32>, vector<1x72x256xf32>, vector<1x16x256xf32> -> vector<1x16x256xf32>
    "tpu.trace_stop"() : () -> ()
    %c0_36 = arith.constant 0 : index
    %c0_37 = arith.constant 0 : index
    %62 = vector.load %arg4[%c0_36, %c0_37] : memref<16x1xf32, #tpu.memory_space<vmem>>, vector<16x1xf32>
    %63 = vector.shape_cast %62 : vector<16x1xf32> to vector<1x16x1xf32>
    %64 = vector.broadcast %63 : vector<1x16x1xf32> to vector<1x16x256xf32>
    %65 = arith.addf %61, %64 : vector<1x16x256xf32>
    %cst_38 = arith.constant 0.000000e+00 : f32
    %66 = vector.broadcast %cst_38 : f32 to vector<1x16x256xf32>
    %67 = arith.maximumf %65, %66 : vector<1x16x256xf32>
    %68 = vector.extract_strided_slice %67 {offsets = [0, 0, 0], sizes = [1, 1, 256], strides = [1, 1, 1]} : vector<1x16x256xf32> to vector<1x1x256xf32>
    %69 = vector.shape_cast %68 : vector<1x1x256xf32> to vector<1x256xf32>
    %c0_39 = arith.constant 0 : index
    %c0_40 = arith.constant 0 : index
    %70 = vector.load %arg13[%c0_39, %c0_40] : memref<1x4096xf32, #tpu.memory_space<vmem>>, vector<1x256xf32>
    tpu.vector_store %arg13[%c0_39, %c0_40], %69 {strides = array<i32>} : memref<1x4096xf32, #tpu.memory_space<vmem>>, vector<1x256xf32>,
    %71 = vector.extract_strided_slice %67 {offsets = [0, 1, 0], sizes = [1, 1, 256], strides = [1, 1, 1]} : vector<1x16x256xf32> to vector<1x1x256xf32>
    %72 = vector.shape_cast %71 : vector<1x1x256xf32> to vector<1x256xf32>
    %c0_41 = arith.constant 0 : index
    %c256 = arith.constant 256 : index
    %73 = vector.load %arg13[%c0_41, %c256] : memref<1x4096xf32, #tpu.memory_space<vmem>>, vector<1x256xf32>
    tpu.vector_store %arg13[%c0_41, %c256], %72 {strides = array<i32>} : memref<1x4096xf32, #tpu.memory_space<vmem>>, vector<1x256xf32>,
    %74 = vector.extract_strided_slice %67 {offsets = [0, 2, 0], sizes = [1, 1, 256], strides = [1, 1, 1]} : vector<1x16x256xf32> to vector<1x1x256xf32>
    %75 = vector.shape_cast %74 : vector<1x1x256xf32> to vector<1x256xf32>
    %c0_42 = arith.constant 0 : index
    %c512 = arith.constant 512 : index
    %76 = vector.load %arg13[%c0_42, %c512] : memref<1x4096xf32, #tpu.memory_space<vmem>>, vector<1x256xf32>
    tpu.vector_store %arg13[%c0_42, %c512], %75 {strides = array<i32>} : memref<1x4096xf32, #tpu.memory_space<vmem>>, vector<1x256xf32>,
    %77 = vector.extract_strided_slice %67 {offsets = [0, 3, 0], sizes = [1, 1, 256], strides = [1, 1, 1]} : vector<1x16x256xf32> to vector<1x1x256xf32>
    %78 = vector.shape_cast %77 : vector<1x1x256xf32> to vector<1x256xf32>
    %c0_43 = arith.constant 0 : index
    %c768 = arith.constant 768 : index
    %79 = vector.load %arg13[%c0_43, %c768] : memref<1x4096xf32, #tpu.memory_space<vmem>>, vector<1x256xf32>
    tpu.vector_store %arg13[%c0_43, %c768], %78 {strides = array<i32>} : memref<1x4096xf32, #tpu.memory_space<vmem>>, vector<1x256xf32>,
    %80 = vector.extract_strided_slice %67 {offsets = [0, 4, 0], sizes = [1, 1, 256], strides = [1, 1, 1]} : vector<1x16x256xf32> to vector<1x1x256xf32>
    %81 = vector.shape_cast %80 : vector<1x1x256xf32> to vector<1x256xf32>
    %c0_44 = arith.constant 0 : index
    %c1024 = arith.constant 1024 : index
    %82 = vector.load %arg13[%c0_44, %c1024] : memref<1x4096xf32, #tpu.memory_space<vmem>>, vector<1x256xf32>
    tpu.vector_store %arg13[%c0_44, %c1024], %81 {strides = array<i32>} : memref<1x4096xf32, #tpu.memory_space<vmem>>, vector<1x256xf32>,
    %83 = vector.extract_strided_slice %67 {offsets = [0, 5, 0], sizes = [1, 1, 256], strides = [1, 1, 1]} : vector<1x16x256xf32> to vector<1x1x256xf32>
    %84 = vector.shape_cast %83 : vector<1x1x256xf32> to vector<1x256xf32>
    %c0_45 = arith.constant 0 : index
    %c1280 = arith.constant 1280 : index
    %85 = vector.load %arg13[%c0_45, %c1280] : memref<1x4096xf32, #tpu.memory_space<vmem>>, vector<1x256xf32>
    tpu.vector_store %arg13[%c0_45, %c1280], %84 {strides = array<i32>} : memref<1x4096xf32, #tpu.memory_space<vmem>>, vector<1x256xf32>,
    %86 = vector.extract_strided_slice %67 {offsets = [0, 6, 0], sizes = [1, 1, 256], strides = [1, 1, 1]} : vector<1x16x256xf32> to vector<1x1x256xf32>
    %87 = vector.shape_cast %86 : vector<1x1x256xf32> to vector<1x256xf32>
    %c0_46 = arith.constant 0 : index
    %c1536 = arith.constant 1536 : index
    %88 = vector.load %arg13[%c0_46, %c1536] : memref<1x4096xf32, #tpu.memory_space<vmem>>, vector<1x256xf32>
    tpu.vector_store %arg13[%c0_46, %c1536], %87 {strides = array<i32>} : memref<1x4096xf32, #tpu.memory_space<vmem>>, vector<1x256xf32>,
    %89 = vector.extract_strided_slice %67 {offsets = [0, 7, 0], sizes = [1, 1, 256], strides = [1, 1, 1]} : vector<1x16x256xf32> to vector<1x1x256xf32>
    %90 = vector.shape_cast %89 : vector<1x1x256xf32> to vector<1x256xf32>
    %c0_47 = arith.constant 0 : index
    %c1792 = arith.constant 1792 : index
    %91 = vector.load %arg13[%c0_47, %c1792] : memref<1x4096xf32, #tpu.memory_space<vmem>>, vector<1x256xf32>
    tpu.vector_store %arg13[%c0_47, %c1792], %90 {strides = array<i32>} : memref<1x4096xf32, #tpu.memory_space<vmem>>, vector<1x256xf32>,
    %92 = vector.extract_strided_slice %67 {offsets = [0, 8, 0], sizes = [1, 1, 256], strides = [1, 1, 1]} : vector<1x16x256xf32> to vector<1x1x256xf32>
    %93 = vector.shape_cast %92 : vector<1x1x256xf32> to vector<1x256xf32>
    %c0_48 = arith.constant 0 : index
    %c2048 = arith.constant 2048 : index
    %94 = vector.load %arg13[%c0_48, %c2048] : memref<1x4096xf32, #tpu.memory_space<vmem>>, vector<1x256xf32>
    tpu.vector_store %arg13[%c0_48, %c2048], %93 {strides = array<i32>} : memref<1x4096xf32, #tpu.memory_space<vmem>>, vector<1x256xf32>,
    %95 = vector.extract_strided_slice %67 {offsets = [0, 9, 0], sizes = [1, 1, 256], strides = [1, 1, 1]} : vector<1x16x256xf32> to vector<1x1x256xf32>
    %96 = vector.shape_cast %95 : vector<1x1x256xf32> to vector<1x256xf32>
    %c0_49 = arith.constant 0 : index
    %c2304 = arith.constant 2304 : index
    %97 = vector.load %arg13[%c0_49, %c2304] : memref<1x4096xf32, #tpu.memory_space<vmem>>, vector<1x256xf32>
    tpu.vector_store %arg13[%c0_49, %c2304], %96 {strides = array<i32>} : memref<1x4096xf32, #tpu.memory_space<vmem>>, vector<1x256xf32>,
    %98 = vector.extract_strided_slice %67 {offsets = [0, 10, 0], sizes = [1, 1, 256], strides = [1, 1, 1]} : vector<1x16x256xf32> to vector<1x1x256xf32>
    %99 = vector.shape_cast %98 : vector<1x1x256xf32> to vector<1x256xf32>
    %c0_50 = arith.constant 0 : index
    %c2560 = arith.constant 2560 : index
    %100 = vector.load %arg13[%c0_50, %c2560] : memref<1x4096xf32, #tpu.memory_space<vmem>>, vector<1x256xf32>
    tpu.vector_store %arg13[%c0_50, %c2560], %99 {strides = array<i32>} : memref<1x4096xf32, #tpu.memory_space<vmem>>, vector<1x256xf32>,
    %101 = vector.extract_strided_slice %67 {offsets = [0, 11, 0], sizes = [1, 1, 256], strides = [1, 1, 1]} : vector<1x16x256xf32> to vector<1x1x256xf32>
    %102 = vector.shape_cast %101 : vector<1x1x256xf32> to vector<1x256xf32>
    %c0_51 = arith.constant 0 : index
    %c2816 = arith.constant 2816 : index
    %103 = vector.load %arg13[%c0_51, %c2816] : memref<1x4096xf32, #tpu.memory_space<vmem>>, vector<1x256xf32>
    tpu.vector_store %arg13[%c0_51, %c2816], %102 {strides = array<i32>} : memref<1x4096xf32, #tpu.memory_space<vmem>>, vector<1x256xf32>,
    %104 = vector.extract_strided_slice %67 {offsets = [0, 12, 0], sizes = [1, 1, 256], strides = [1, 1, 1]} : vector<1x16x256xf32> to vector<1x1x256xf32>
    %105 = vector.shape_cast %104 : vector<1x1x256xf32> to vector<1x256xf32>
    %c0_52 = arith.constant 0 : index
    %c3072 = arith.constant 3072 : index
    %106 = vector.load %arg13[%c0_52, %c3072] : memref<1x4096xf32, #tpu.memory_space<vmem>>, vector<1x256xf32>
    tpu.vector_store %arg13[%c0_52, %c3072], %105 {strides = array<i32>} : memref<1x4096xf32, #tpu.memory_space<vmem>>, vector<1x256xf32>,
    %107 = vector.extract_strided_slice %67 {offsets = [0, 13, 0], sizes = [1, 1, 256], strides = [1, 1, 1]} : vector<1x16x256xf32> to vector<1x1x256xf32>
    %108 = vector.shape_cast %107 : vector<1x1x256xf32> to vector<1x256xf32>
    %c0_53 = arith.constant 0 : index
    %c3328 = arith.constant 3328 : index
    %109 = vector.load %arg13[%c0_53, %c3328] : memref<1x4096xf32, #tpu.memory_space<vmem>>, vector<1x256xf32>
    tpu.vector_store %arg13[%c0_53, %c3328], %108 {strides = array<i32>} : memref<1x4096xf32, #tpu.memory_space<vmem>>, vector<1x256xf32>,
    %110 = vector.extract_strided_slice %67 {offsets = [0, 14, 0], sizes = [1, 1, 256], strides = [1, 1, 1]} : vector<1x16x256xf32> to vector<1x1x256xf32>
    %111 = vector.shape_cast %110 : vector<1x1x256xf32> to vector<1x256xf32>
    %c0_54 = arith.constant 0 : index
    %c3584 = arith.constant 3584 : index
    %112 = vector.load %arg13[%c0_54, %c3584] : memref<1x4096xf32, #tpu.memory_space<vmem>>, vector<1x256xf32>
    tpu.vector_store %arg13[%c0_54, %c3584], %111 {strides = array<i32>} : memref<1x4096xf32, #tpu.memory_space<vmem>>, vector<1x256xf32>,
    %113 = vector.extract_strided_slice %67 {offsets = [0, 15, 0], sizes = [1, 1, 256], strides = [1, 1, 1]} : vector<1x16x256xf32> to vector<1x1x256xf32>
    %114 = vector.shape_cast %113 : vector<1x1x256xf32> to vector<1x256xf32>
    %c0_55 = arith.constant 0 : index
    %c3840 = arith.constant 3840 : index
    %115 = vector.load %arg13[%c0_55, %c3840] : memref<1x4096xf32, #tpu.memory_space<vmem>>, vector<1x256xf32>
    tpu.vector_store %arg13[%c0_55, %c3840], %114 {strides = array<i32>} : memref<1x4096xf32, #tpu.memory_space<vmem>>, vector<1x256xf32>,
    %c0_56 = arith.constant 0 : index
    %c0_57 = arith.constant 0 : index
    %116 = vector.load %arg13[%c0_56, %c0_57] : memref<1x4096xf32, #tpu.memory_space<vmem>>, vector<1x4096xf32>
    %c0_58 = arith.constant 0 : index
    %c0_59 = arith.constant 0 : index
    %117 = vector.load %arg5[%c0_58, %c0_59] : memref<4096x64xf32, #tpu.memory_space<vmem>>, vector<4096x64xf32>
    %cst_60 = arith.constant dense<0.000000e+00> : vector<1x64xf32>
    %118 = tpu.matmul %116, %117, %cst_60 {dimension_numbers = #tpu.dot_dimension_numbers<[1], [0], [0], [1], [0, 0, 1, 1], [], []>} : vector<1x4096xf32>, vector<4096x64xf32>, vector<1x64xf32> -> vector<1x64xf32>
    %c0_61 = arith.constant 0 : index
    %c0_62 = arith.constant 0 : index
    %119 = vector.load %arg6[%c0_61, %c0_62] : memref<1x64xf32, #tpu.memory_space<vmem>>, vector<1x64xf32>
    %120 = arith.addf %118, %119 : vector<1x64xf32>
    %cst_63 = arith.constant 0.000000e+00 : f32
    %121 = vector.broadcast %cst_63 : f32 to vector<1x64xf32>
    %122 = arith.maximumf %120, %121 : vector<1x64xf32>
    %c0_64 = arith.constant 0 : index
    %c0_65 = arith.constant 0 : index
    %123 = vector.load %arg7[%c0_64, %c0_65] : memref<64x32xf32, #tpu.memory_space<vmem>>, vector<64x32xf32>
    %cst_66 = arith.constant dense<0.000000e+00> : vector<1x32xf32>
    %124 = tpu.matmul %122, %123, %cst_66 {dimension_numbers = #tpu.dot_dimension_numbers<[1], [0], [0], [1], [0, 0, 1, 1], [], []>} : vector<1x64xf32>, vector<64x32xf32>, vector<1x32xf32> -> vector<1x32xf32>
    %c0_67 = arith.constant 0 : index
    %c0_68 = arith.constant 0 : index
    %125 = vector.load %arg8[%c0_67, %c0_68] : memref<1x32xf32, #tpu.memory_space<vmem>>, vector<1x32xf32>
    %126 = arith.addf %124, %125 : vector<1x32xf32>
    %cst_69 = arith.constant 0.000000e+00 : f32
    %127 = vector.broadcast %cst_69 : f32 to vector<1x32xf32>
    %128 = arith.maximumf %126, %127 : vector<1x32xf32>
    %c0_70 = arith.constant 0 : index
    %c0_71 = arith.constant 0 : index
    %129 = vector.load %arg9[%c0_70, %c0_71] : memref<32x1xf32, #tpu.memory_space<vmem>>, vector<32x1xf32>
    %cst_72 = arith.constant dense<0.000000e+00> : vector<1x1xf32>
    %130 = tpu.matmul %128, %129, %cst_72 {dimension_numbers = #tpu.dot_dimension_numbers<[1], [0], [0], [1], [0, 0, 1, 1], [], []>} : vector<1x32xf32>, vector<32x1xf32>, vector<1x1xf32> -> vector<1x1xf32>
    %c0_73 = arith.constant 0 : index
    %c0_74 = arith.constant 0 : index
    %131 = vector.load %arg10[%c0_73, %c0_74] : memref<1x1xf32, #tpu.memory_space<vmem>>, vector<1x1xf32>
    %132 = arith.addf %130, %131 : vector<1x1xf32>
    %133 = vector.shape_cast %132 : vector<1x1xf32> to vector<1x1x1xf32>
    %c0_75 = arith.constant 0 : index
    %c0_76 = arith.constant 0 : index
    %c0_77 = arith.constant 0 : index
    %134 = vector.load %arg11[%c0_75, %c0_76, %c0_77] : memref<1x1x1xf32, #tpu.memory_space<vmem>>, vector<1x1x1xf32>
    tpu.vector_store %arg11[%c0_75, %c0_76, %c0_77], %133 {strides = array<i32>} : memref<1x1x1xf32, #tpu.memory_space<vmem>>, vector<1x1x1xf32>,
    return
  }
  func.func @transform_0(%arg0: i32) -> (i32, i32, i32) {
    %c0_i32 = arith.constant 0 : i32
    %c0_i32_0 = arith.constant 0 : i32
    %c0_i32_1 = arith.constant 0 : i32
    return %arg0, %c0_i32, %c0_i32_0 : i32, i32, i32
  }
  func.func @transform_1(%arg0: i32) -> (i32, i32) {
    %c0_i32 = arith.constant 0 : i32
    %c0_i32_0 = arith.constant 0 : i32
    %c0_i32_1 = arith.constant 0 : i32
    return %c0_i32, %c0_i32_0 : i32, i32
  }
  func.func @transform_2(%arg0: i32) -> (i32, i32) {
    %c0_i32 = arith.constant 0 : i32
    %c0_i32_0 = arith.constant 0 : i32
    %c0_i32_1 = arith.constant 0 : i32
    return %c0_i32, %c0_i32_0 : i32, i32
  }
  func.func @transform_3(%arg0: i32) -> (i32, i32) {
    %c0_i32 = arith.constant 0 : i32
    %c0_i32_0 = arith.constant 0 : i32
    %c0_i32_1 = arith.constant 0 : i32
    return %c0_i32, %c0_i32_0 : i32, i32
  }
  func.func @transform_4(%arg0: i32) -> (i32, i32) {
    %c0_i32 = arith.constant 0 : i32
    %c0_i32_0 = arith.constant 0 : i32
    %c0_i32_1 = arith.constant 0 : i32
    return %c0_i32, %c0_i32_0 : i32, i32
  }
  func.func @transform_5(%arg0: i32) -> (i32, i32) {
    %c0_i32 = arith.constant 0 : i32
    %c0_i32_0 = arith.constant 0 : i32
    %c0_i32_1 = arith.constant 0 : i32
    return %c0_i32, %c0_i32_0 : i32, i32
  }
  func.func @transform_6(%arg0: i32) -> (i32, i32) {
    %c0_i32 = arith.constant 0 : i32
    %c0_i32_0 = arith.constant 0 : i32
    %c0_i32_1 = arith.constant 0 : i32
    return %c0_i32, %c0_i32_0 : i32, i32
  }
  func.func @transform_7(%arg0: i32) -> (i32, i32) {
    %c0_i32 = arith.constant 0 : i32
    %c0_i32_0 = arith.constant 0 : i32
    %c0_i32_1 = arith.constant 0 : i32
    return %c0_i32, %c0_i32_0 : i32, i32
  }
  func.func @transform_8(%arg0: i32) -> (i32, i32) {
    %c0_i32 = arith.constant 0 : i32
    %c0_i32_0 = arith.constant 0 : i32
    %c0_i32_1 = arith.constant 0 : i32
    return %c0_i32, %c0_i32_0 : i32, i32
  }
  func.func @transform_9(%arg0: i32) -> (i32, i32) {
    %c0_i32 = arith.constant 0 : i32
    %c0_i32_0 = arith.constant 0 : i32
    %c0_i32_1 = arith.constant 0 : i32
    return %c0_i32, %c0_i32_0 : i32, i32
  }
  func.func @transform_10(%arg0: i32) -> (i32, i32, i32) {
    %c0_i32 = arith.constant 0 : i32
    %c0_i32_0 = arith.constant 0 : i32
    %c0_i32_1 = arith.constant 0 : i32
    return %arg0, %c0_i32, %c0_i32_0 : i32, i32, i32
  }
}

</mosaic_0001>

<bundles_post_ra>
// kernel: tpu_custom_call.1
= control target key start
LH: loop header
LB: loop body
LE: loop exit
PB: predicated region body
PF: predicated region fallthrough
CT: control target
= control target key end

     0   :  { %s2153_s15 = smov 0   ;;  %s3942_s0 = inlined_call_operand.vmem [shape: f32[2,8,256], index: 0, kind: input, shape index: {}]   ;;  %s3943_s1 = inlined_call_operand.vmem [shape: f32[9,256], index: 1, kind: input, shape index: {}]   ;;  %s3944_s2 = inlined_call_operand.vmem [shape: f32[16,72], index: 2, kind: input, shape index: {}]   ;;  %s3945_s3 = inlined_call_operand.vmem [shape: f32[16,1], index: 3, kind: input, shape index: {}]   ;;  %s3946_s4 = inlined_call_operand.vmem [shape: f32[4096,64], index: 4, kind: input, shape index: {}]   ;;  %s3947_s5 = inlined_call_operand.vmem [shape: f32[1,64], index: 5, kind: input, shape index: {}]   ;;  %s3948_s6 = inlined_call_operand.vmem [shape: f32[64,32], index: 6, kind: input, shape index: {}]   ;;  %s3949_s7 = inlined_call_operand.vmem [shape: f32[1,32], index: 7, kind: input, shape index: {}]   ;;  %s3950_s8 = inlined_call_operand.vmem [shape: f32[32,1], index: 8, kind: input, shape index: {}]   ;;  %s3951_s9 = inlined_call_operand.<no memory space> [shape: f32[1,1], index: 9, kind: input, shape index: {}]   ;;  %s3952_s10 = inlined_call_operand.vmem [shape: f32[2,1,1], index: 10, kind: output, shape index: {}]  }
   0x1   :  { %v15_v0 = vstv %s3951_s9 }
   0x2   :  { %16 = vst [vmem:[#allocation4] sm:$0x1] %v15_v0 }
   0x3 LB: > { %s2035_s16 = sadd.s32 4294967295, %s2084_s15   ;;  %p2039_p0 = scmp.ge.s32.totalorder %s2084_s15, 1  ;;  %s2084_s15 = sphi %s2153_s15, %s22_s15  }
   0x4   : > { %p314_p1 = scmp.lt.s32.totalorder %s2084_s15, 3 }
   0x6   : > { %p315_p2 = pnand %p2039_p0, %p314_p1 }
   0x7   : > { %p350_p3 = scmp.lt.s32.totalorder (!%p315_p2), %s2035_s16, 1  ;;  %s2086_s20 = smov (!%p315_p2), 112  }
   0x8   : > { %318 = sbr.rel (%p315_p2) target bundleno = 964 (0x3c4), region = 60  ;;  %s2087_s21 = smov (!%p315_p2), 111  }
   0x9   : > { %s2088_s22 = smov (!%p315_p2), 113   ;;  %s2089_s23 = smov (!%p315_p2), 127  }
   0xa   : > { %s2090_s24 = smov (!%p315_p2), 1   ;;  %s2091_s25 = smov (!%p315_p2), 15  }
   0xb   : > { %s2092_s26 = smov (!%p315_p2), 16   ;;  %s2093_s27 = smov (!%p315_p2), 17  }
   0xd   : > { %s3956_s16 = smov (!%p350_p3, %s2035_s16), 1  ;;  %v364_v4 = vlaneseq  ;;  %v2048_v8 = vld [vmem:[%s3943_s1 + $0x10] ss:$8 sm:$0x3]  ;;  %v527_v36 = vld [vmem:[%s3945_s3] sm:$0xff]  ;;  %v2094_v37 = vmov 0  }
   0xe   : > { %s2057_s9 = sshll.u32 %s3956_s16, 4  ;;  %v2047_v10 = vld [vmem:[%s3943_s1 + $0x7] ss:$8 sm:$0x3]  ;;  %v499_v11 = vperm.slane %v2048_v8, 0  ;;  %v500_v12 = vperm.slane %v2048_v8, 1  ;;  %2075 = vset.pattern.permute.xlu1 %v2094_v37  ;;  %2076 = vset.pattern.permute.xlu2 %v2094_v37 }
   0xf   : > { %s354_s19 = scalar_lea.vmem %s3942_s0, %s2057_s9  ;;  %v2188_v7 = vand.u32 127, %v364_v4  ;;  %v2046_v13 = vld [vmem:[%s3943_s1 + $0x6] ss:$8 sm:$0x3]  ;;  %v481_v16 = vperm.slane %v2047_v10, 0  ;;  %v482_v17 = vperm.slane %v2047_v10, 1  ;;  %2077 = vset.pattern.permute.xlu0 %v2094_v37 }
  0x10   : > { %v2167_v1 = vld [vmem:[%s354_s19] sm:$0xff]  ;;  %v2172_v2 = vld [vmem:[%s354_s19 + $0x8] sm:$0xff]  ;;  %v463_v24 = vperm.slane %v2046_v13, 0  ;;  %v464_v25 = vperm.slane %v2046_v13, 1  ;;  %v716_v47 = vld [vmem:[%s3946_s4 + $0x78] sm:$0xff]  ;;  %vm539_vm8 = vcmask 588800  }
  0x11   : > { %471 = vrot.lane.b32.xlu1 %v2167_v1, %s2086_s20  ;;  %489 = vrot.lane.b32.xlu0 %v2167_v1, %s2087_s21  ;;  %vm475_vm0 = vcmp.lt.s32.totalorder %v2188_v7, 112  ;;  %vm493_vm1 = vcmp.lt.s32.totalorder %v2188_v7, 111  ;;  %vm457_vm2 = vcmp.lt.s32.totalorder %v2188_v7, 113  ;;  %v2045_v28 = vld [vmem:[%s3943_s1 + $0x5] ss:$8 sm:$0x3] }
  0x12   : > { %453 = vrot.lane.b32.xlu2 %v2167_v1, %s2088_s22  ;;  %vm439_vm3 = vcmp.lt.s32.totalorder %v2188_v7, 127  ;;  %v445_v34 = vperm.slane %v2045_v28, 0  ;;  %v446_v35 = vperm.slane %v2045_v28, 1  ;;  %v2044_v44 = vld [vmem:[%s3943_s1 + $0x3] ss:$8 sm:$0x3]  ;;  %1282 = vmatpush.msra.mxu2 %v716_v47 }
  0x13   : > { %v2043_v45 = vld [vmem:[%s3943_s1 + $0x2] ss:$8 sm:$0x3]  ;;  %vm419_vm4 = vcmp.lt.s32.totalorder %v2188_v7, 1  ;;  %v425_v46 = vperm.slane %v2044_v44, 0  ;;  %v732_v48 = vld [vmem:[%s3946_s4 + $0xf8] sm:$0xff] }
  0x14   : > { %v426_v49 = vperm.slane %v2044_v44, 1  ;;  %vm401_vm5 = vcmp.lt.s32.totalorder %v2188_v7, 15  ;;  %v407_v51 = vperm.slane %v2043_v45, 0  ;;  %v408_v52 = vperm.slane %v2043_v45, 1  ;;  %v715_v53 = vld [vmem:[%s3946_s4 + $0x70] sm:$0xff]  ;;  %1302 = vmatpush.msra.mxu3 %v732_v48  ;;  %v714_v57 = vld [vmem:[%s3946_s4 + $0x68] sm:$0xff] }
  0x15   : > { %v731_v54 = vld [vmem:[%s3946_s4 + $0xf0] sm:$0xff]  ;;  %1283 = vmatpush.msra.mxu2 %v715_v53  ;;  %v712_v8 = vld [vmem:[%s3946_s4 + $0x58] sm:$0xff]  ;;  %vm383_vm6 = vcmp.lt.s32.totalorder %v2188_v7, 16  ;;  %vm366_vm7 = vcmp.lt.s32.totalorder %v2188_v7, 17  ;;  %v706_v7 = vld [vmem:[%s3946_s4 + $0x28] sm:$0xff]  ;;  %vm599_vm9 = vcmask 1040384  }
  0x16   : > { %1303 = vmatpush.msra.mxu3 %v731_v54  ;;  %v711_v13 = vld [vmem:[%s3946_s4 + $0x50] sm:$0xff]  ;;  %v721_v45 = vld [vmem:[%s3946_s4 + $0xa0] sm:$0xff]  ;;  %v762_v47 = vld [vmem:[%s3946_s4 + $0x1e8] sm:$0xff]  ;;  %vm2577_vm10 = vcmp.lt.s32.totalorder %v364_v4, 256  ;;  %vm1932_vm11 = vcmask 523264   ;;  %vm1962_vm12 = vcmask 261120  }
  0x17   : > { %1284 = vmatpush.msra.mxu2 %v714_v57  ;;  %v763_v44 = vld [vmem:[%s3946_s4 + $0x1f0] sm:$0xff]  ;;  %v745_v48 = vld [vmem:[%s3946_s4 + $0x160] sm:$0xff]  ;;  %vm1986_vm13 = vcmask 0  }
  0x18   : > { %v743_v53 = vld [vmem:[%s3946_s4 + $0x150] sm:$0xff]  ;;  %v741_v57 = vld [vmem:[%s3946_s4 + $0x140] sm:$0xff] }
  0x19   : > { %473 = vrot.lane.b32.xlu1 %v2172_v2, %s2086_s20  ;;  %491 = vrot.lane.b32.xlu0 %v2172_v2, %s2087_s21  ;;  %v759_v54 = vld [vmem:[%s3946_s4 + $0x1d0] sm:$0xff]  ;;  %v801_v4 = vld [vmem:[%s3946_s4 + $0x320] sm:$0xff] }
  0x1a   : > { %455 = vrot.lane.b32.xlu2 %v2172_v2, %s2088_s22 }
  0x21   : > { %437 = vrot.lane.b32.xlu1 %v2172_v2, %s2089_s23  ;;  %435 = vrot.lane.b32.xlu0 %v2167_v1, %s2089_s23  ;;  %s357_s23 = scalar_lea.vmem %s3952_s10, %s3956_s16 }
  0x22   : > { %415 = vrot.lane.b32.xlu2 %v2167_v1, %s2090_s24 }
  0x29   : > { %397 = vrot.lane.b32.xlu1 %v2167_v1, %s2091_s25  ;;  %417 = vrot.lane.b32.xlu0 %v2172_v2, %s2090_s24 }
  0x2a   : > { %399 = vrot.lane.b32.xlu2 %v2172_v2, %s2091_s25 }
  0x31   : > { %381 = vrot.lane.b32.xlu1 %v2172_v2, %s2092_s26  ;;  %379 = vrot.lane.b32.xlu0 %v2167_v1, %s2092_s26 }
  0x32   : > { %360 = vrot.lane.b32.xlu2 %v2167_v1, %s2093_s27 }
  0x39   : > { %362 = vrot.lane.b32.xlu0 %v2172_v2, %s2093_s27  ;;  %531 = vperm.xlu1 %2075, %v527_v36  }
  0x6c   : > { %v454_v3 = vpop.permute.xlu2 %453 }
  0x74   : > { %v456_v9 = vpop.permute.xlu2 %455 }
  0x75   : > { %v458_v26 = vsel %vm457_vm2, %v454_v3, %v456_v9  ;;  %v459_v27 = vsel %vm457_vm2, %v456_v9, %v454_v3  ;;  %v713_v3 = vld [vmem:[%s3946_s4 + $0x60] sm:$0xff]  ;;  %v528_v9 = vld [vmem:[%s3945_s3 + $0x8] sm:$0xff] }
  0x76   : > { %v467_v32 = vmul.f32 %v463_v24, %v458_v26  ;;  %v468_v33 = vmul.f32 %v464_v25, %v459_v27  ;;  %1285 = vmatpush.msra.mxu2 %v713_v3  ;;  %536 = vperm.xlu2 %2076, %v528_v9   ;;  %v369_v24 = vld [vmem:[%s3943_s1] ss:$8 sm:$0x3]  ;;  %v708_v26 = vld [vmem:[%s3946_s4 + $0x38] sm:$0xff]  ;;  %v703_v9 = vld [vmem:[%s3946_s4 + $0x10] sm:$0xff] }
  0x77   : > { %v725_v25 = vld [vmem:[%s3946_s4 + $0xc0] sm:$0xff]  ;;  %v371_v28 = vperm.slane %v369_v24, 0  ;;  %v704_v3 = vld [vmem:[%s3946_s4 + $0x18] sm:$0xff] }
  0x78   : > { %1286 = vmatpush.msra.mxu2 %v712_v8  ;;  %v752_v8 = vld [vmem:[%s3946_s4 + $0x198] sm:$0xff] }
  0x7a   : > { %1287 = vmatpush.msra.mxu2 %v711_v13  ;;  %v702_v13 = vld [vmem:[%s3946_s4 + $0x8] sm:$0xff] }
  0x7c   : > { %v416_v31 = vpop.permute.xlu2 %415 }
  0x83   : > { %v472_v5 = vpop.permute.xlu1 %471  ;;  %v490_v6 = vpop.permute.xlu0 %489 }
  0x84   : > { %v400_v50 = vpop.permute.xlu2 %399 }
  0x8b   : > { %v474_v14 = vpop.permute.xlu1 %473  ;;  %v492_v15 = vpop.permute.xlu0 %491 }
  0x8c   : > { %v476_v18 = vsel %vm475_vm0, %v472_v5, %v474_v14  ;;  %v477_v19 = vsel %vm475_vm0, %v474_v14, %v472_v5  ;;  %v494_v20 = vsel %vm493_vm1, %v490_v6, %v492_v15  ;;  %v495_v21 = vsel %vm493_vm1, %v492_v15, %v490_v6  ;;  %v2042_v5 = vld [vmem:[%s3943_s1 + $0x1] ss:$8 sm:$0x3]  ;;  %v361_v27 = vpop.permute.xlu2 %360 }
  0x8d   : > { %v503_v22 = vmul.f32 %v499_v11, %v494_v20  ;;  %v504_v23 = vmul.f32 %v500_v12, %v495_v21  ;;  %v485_v29 = vmul.f32 %v481_v16, %v476_v18  ;;  %v486_v30 = vmul.f32 %v482_v17, %v477_v19  ;;  %v729_v6 = vld [vmem:[%s3946_s4 + $0xe0] sm:$0xff]  ;;  %v728_v12 = vld [vmem:[%s3946_s4 + $0xd8] sm:$0xff]  ;;  %v727_v16 = vld [vmem:[%s3946_s4 + $0xd0] sm:$0xff] }
  0x8e   : > { %v389_v10 = vperm.slane %v2042_v5, 0  ;;  %v390_v11 = vperm.slane %v2042_v5, 1  ;;  %v710_v17 = vld [vmem:[%s3946_s4 + $0x48] sm:$0xff]  ;;  %v720_v5 = vld [vmem:[%s3946_s4 + $0x98] sm:$0xff] }
  0x8f   : > { %553 = vmatpush.msra.mxu0 %v503_v22  ;;  %576 = vmatpush.msra.mxu1 %v504_v23  ;;  %v726_v22 = vld [vmem:[%s3946_s4 + $0xc8] sm:$0xff]  ;;  %v709_v23 = vld [vmem:[%s3946_s4 + $0x40] sm:$0xff] }
  0x90   : > { %1288 = vmatpush.msra.mxu2 %v710_v17  ;;  %v701_v17 = vld [vmem:[%s3946_s4] sm:$0xff] }
  0x91   : > { %554 = vmatpush.msra.mxu0 %v485_v29  ;;  %577 = vmatpush.msra.mxu1 %v486_v30  ;;  %v372_v29 = vperm.slane %v369_v24, 1  ;;  %v724_v30 = vld [vmem:[%s3946_s4 + $0xb8] sm:$0xff] }
  0x92   : > { %1289 = vmatpush.msra.mxu2 %v709_v23  ;;  %v812_v23 = vld [vmem:[%s3946_s4 + $0x378] sm:$0xff] }
  0x93   : > { %v438_v38 = vpop.permute.xlu1 %437  ;;  %555 = vmatpush.msra.mxu0 %v467_v32  ;;  %578 = vmatpush.msra.mxu1 %v468_v33  ;;  %v436_v39 = vpop.permute.xlu0 %435  ;;  %v723_v33 = vld [vmem:[%s3946_s4 + $0xb0] sm:$0xff]  ;;  %v828_v24 = vld [vmem:[%s3946_s4 + $0x3f8] sm:$0xff] }
  0x94   : > { %v440_v40 = vsel %vm439_vm3, %v436_v39, %v438_v38  ;;  %v441_v41 = vsel %vm439_vm3, %v438_v38, %v436_v39  ;;  %1290 = vmatpush.msra.mxu2 %v708_v26  ;;  %v507_v38 = vld [vmem:[%s3944_s2] sm:$0xff]  ;;  %v748_v39 = vld [vmem:[%s3946_s4 + $0x178] sm:$0xff]  ;;  %v795_v26 = vld [vmem:[%s3946_s4 + $0x2f0] sm:$0xff] }
  0x95   : > { %v449_v42 = vmul.f32 %v445_v34, %v440_v40  ;;  %v450_v43 = vmul.f32 %v446_v35, %v441_v41  ;;  %v764_v40 = vld [vmem:[%s3946_s4 + $0x1f8] sm:$0xff]  ;;  %v722_v41 = vld [vmem:[%s3946_s4 + $0xa8] sm:$0xff] }
  0x97   : > { %556 = vmatpush.msra.mxu0 %v449_v42  ;;  %579 = vmatpush.msra.mxu1 %v450_v43  ;;  %v705_v42 = vld [vmem:[%s3946_s4 + $0x20] sm:$0xff]  ;;  %v747_v43 = vld [vmem:[%s3946_s4 + $0x170] sm:$0xff] }
  0x99   : > { %557 = vmatpush.msra.mxu0 %v2167_v1  ;;  %580 = vmatpush.msra.mxu1 %v2172_v2  ;;  %v730_v2 = vld [vmem:[%s3946_s4 + $0xe8] sm:$0xff] }
  0x9a   : > { %1304 = vmatpush.msra.mxu3 %v730_v2  ;;  %v753_v2 = vld [vmem:[%s3946_s4 + $0x1a0] sm:$0xff] }
  0x9b   : > { %v398_v55 = vpop.permute.xlu1 %397  ;;  %v418_v56 = vpop.permute.xlu0 %417 }
  0x9c   : > { %v420_v58 = vsel %vm419_vm4, %v416_v31, %v418_v56  ;;  %v421_v59 = vsel %vm419_vm4, %v418_v56, %v416_v31  ;;  %v402_v60 = vsel %vm401_vm5, %v398_v55, %v400_v50  ;;  %v403_v61 = vsel %vm401_vm5, %v400_v50, %v398_v55  ;;  %1305 = vmatpush.msra.mxu3 %v729_v6  ;;  %v707_v31 = vld [vmem:[%s3946_s4 + $0x30] sm:$0xff]  ;;  %v508_v50 = vld [vmem:[%s3944_s2 + $0x8] sm:$0xff]  ;;  %v736_v6 = vld [vmem:[%s3946_s4 + $0x118] sm:$0xff] }
  0x9d   : > { %v429_v62 = vmul.f32 %v425_v46, %v421_v59  ;;  %v430_v63 = vmul.f32 %v426_v49, %v420_v58  ;;  %v411_v0 = vmul.f32 %v407_v51, %v403_v61  ;;  %v412_v1 = vmul.f32 %v408_v52, %v402_v60  ;;  %1291 = vmatpush.msra.mxu2 %v707_v31  ;;  %v746_v46 = vld [vmem:[%s3946_s4 + $0x168] sm:$0xff]  ;;  %v761_v49 = vld [vmem:[%s3946_s4 + $0x1e0] sm:$0xff]  ;;  %v744_v51 = vld [vmem:[%s3946_s4 + $0x158] sm:$0xff] }
  0x9e   : > { %1306 = vmatpush.msra.mxu3 %v728_v12  ;;  %v760_v52 = vld [vmem:[%s3946_s4 + $0x1d8] sm:$0xff]  ;;  %v742_v55 = vld [vmem:[%s3946_s4 + $0x148] sm:$0xff]  ;;  %v757_v58 = vld [vmem:[%s3946_s4 + $0x1c0] sm:$0xff] }
  0x9f   : > { %558 = vmatpush.msra.mxu0 %v429_v62  ;;  %581 = vmatpush.msra.mxu1 %v430_v63  ;;  %v758_v56 = vld [vmem:[%s3946_s4 + $0x1c8] sm:$0xff]  ;;  %v740_v59 = vld [vmem:[%s3946_s4 + $0x138] sm:$0xff]  ;;  %v739_v61 = vld [vmem:[%s3946_s4 + $0x130] sm:$0xff] }
  0xa0   : > { %1307 = vmatpush.msra.mxu3 %v727_v16  ;;  %1292 = vmatpush.msra.mxu2 %v706_v7  ;;  %v756_v60 = vld [vmem:[%s3946_s4 + $0x1b8] sm:$0xff]  ;;  %v755_v62 = vld [vmem:[%s3946_s4 + $0x1b0] sm:$0xff]  ;;  %v738_v63 = vld [vmem:[%s3946_s4 + $0x128] sm:$0xff] }
  0xa1   : > { %559 = vmatpush.msra.mxu0 %v411_v0  ;;  %582 = vmatpush.msra.mxu1 %v412_v1  ;;  %v754_v0 = vld [vmem:[%s3946_s4 + $0x1a8] sm:$0xff]  ;;  %v737_v1 = vld [vmem:[%s3946_s4 + $0x120] sm:$0xff]  ;;  %v751_v12 = vld [vmem:[%s3946_s4 + $0x190] sm:$0xff] }
  0xa2   : > { %1308 = vmatpush.msra.mxu3 %v726_v22  ;;  %1293 = vmatpush.msra.mxu2 %v705_v42  ;;  %v750_v16 = vld [vmem:[%s3946_s4 + $0x188] sm:$0xff]  ;;  %v796_v22 = vld [vmem:[%s3946_s4 + $0x2f8] sm:$0xff]  ;;  %v793_v7 = vld [vmem:[%s3946_s4 + $0x2e0] sm:$0xff] }
  0xa3   : > { %v382_v14 = vpop.permute.xlu1 %381  ;;  %v380_v15 = vpop.permute.xlu0 %379  ;;  %v810_v31 = vld [vmem:[%s3946_s4 + $0x368] sm:$0xff]  ;;  %v807_v42 = vld [vmem:[%s3946_s4 + $0x350] sm:$0xff] }
  0xa4   : > { %v384_v18 = vsel %vm383_vm6, %v380_v15, %v382_v14  ;;  %v385_v19 = vsel %vm383_vm6, %v382_v14, %v380_v15  ;;  %1309 = vmatpush.msra.mxu3 %v725_v25  ;;  %1294 = vmatpush.msra.mxu2 %v704_v3  ;;  %v718_v14 = vld [vmem:[%s3946_s4 + $0x88] sm:$0xff]  ;;  %v779_v25 = vld [vmem:[%s3946_s4 + $0x270] sm:$0xff] }
  0xa5   : > { %v393_v20 = vmul.f32 %v389_v10, %v385_v19  ;;  %v394_v21 = vmul.f32 %v390_v11, %v384_v18  ;;  %v719_v10 = vld [vmem:[%s3946_s4 + $0x90] sm:$0xff]  ;;  %v734_v15 = vld [vmem:[%s3946_s4 + $0x108] sm:$0xff]  ;;  %v717_v18 = vld [vmem:[%s3946_s4 + $0x80] sm:$0xff] }
  0xa6   : > { %1310 = vmatpush.msra.mxu3 %v724_v30  ;;  %v735_v11 = vld [vmem:[%s3946_s4 + $0x110] sm:$0xff]  ;;  %1295 = vmatpush.msra.mxu2 %v703_v9  ;;  %v733_v19 = vld [vmem:[%s3946_s4 + $0x100] sm:$0xff]  ;;  %v794_v30 = vld [vmem:[%s3946_s4 + $0x2e8] sm:$0xff] }
  0xa7   : > { %560 = vmatpush.msra.mxu0 %v393_v20  ;;  %583 = vmatpush.msra.mxu1 %v394_v21  ;;  %v749_v20 = vld [vmem:[%s3946_s4 + $0x180] sm:$0xff]  ;;  %v780_v21 = vld [vmem:[%s3946_s4 + $0x278] sm:$0xff]  ;;  %v770_v3 = vld [vmem:[%s3946_s4 + $0x228] sm:$0xff] }
  0xa8   : > { %1311 = vmatpush.msra.mxu3 %v723_v33  ;;  %1296 = vmatpush.msra.mxu2 %v702_v13  ;;  %v777_v33 = vld [vmem:[%s3946_s4 + $0x260] sm:$0xff]  ;;  %v1007_v9 = vld [vmem:[%s3946_s4 + $0x990] sm:$0xff] }
  0xa9   : > { %v817_v13 = vld [vmem:[%s3946_s4 + $0x3a0] sm:$0xff] }
  0xaa   : > { %1312 = vmatpush.msra.mxu3 %v722_v41  ;;  %1297 = vmatpush.msra.mxu2 %v701_v17  ;;  %v791_v41 = vld [vmem:[%s3946_s4 + $0x2d0] sm:$0xff]  ;;  %v800_v17 = vld [vmem:[%s3946_s4 + $0x318] sm:$0xff] }
  0xab   : > { %v363_v32 = vpop.permute.xlu0 %362 }
  0xac   : > { %v367_v34 = vsel %vm366_vm7, %v361_v27, %v363_v32  ;;  %v368_v35 = vsel %vm366_vm7, %v363_v32, %v361_v27  ;;  %1313 = vmatpush.msra.mxu3 %v721_v45  ;;  %1362 = vmatpush.msrb.mxu2 %v780_v21  ;;  %v811_v27 = vld [vmem:[%s3946_s4 + $0x370] sm:$0xff]  ;;  %v826_v32 = vld [vmem:[%s3946_s4 + $0x3e8] sm:$0xff] }
  0xad   : > { %v375_v36 = vmul.f32 %v371_v28, %v368_v35  ;;  %v376_v37 = vmul.f32 %v372_v29, %v367_v34  ;;  %v827_v28 = vld [vmem:[%s3946_s4 + $0x3f0] sm:$0xff]  ;;  %v778_v29 = vld [vmem:[%s3946_s4 + $0x268] sm:$0xff]  ;;  %v809_v34 = vld [vmem:[%s3946_s4 + $0x360] sm:$0xff] }
  0xae   : > { %1314 = vmatpush.msra.mxu3 %v720_v5  ;;  %1363 = vmatpush.msrb.mxu2 %v779_v25  ;;  %v825_v35 = vld [vmem:[%s3946_s4 + $0x3e0] sm:$0xff]  ;;  %v790_v45 = vld [vmem:[%s3946_s4 + $0x2c8] sm:$0xff]  ;;  %v799_v21 = vld [vmem:[%s3946_s4 + $0x310] sm:$0xff] }
  0xaf   : > { %561 = vmatpush.msra.mxu0 %v375_v36  ;;  %584 = vmatpush.msra.mxu1 %v376_v37  ;;  %v776_v36 = vld [vmem:[%s3946_s4 + $0x258] sm:$0xff]  ;;  %v786_v5 = vld [vmem:[%s3946_s4 + $0x2a8] sm:$0xff] }
  0xb0   : > { %2049 = vmatmul.msk.f32.vlgmr.msra.gmra.mxu0 %vm539_vm8, %v507_v38  ;;  %2051 = vmatmul.msk.f32.vlgmr.msra.gmra.mxu1 %vm539_vm8, %v507_v38  ;;  %v792_v37 = vld [vmem:[%s3946_s4 + $0x2d8] sm:$0xff]  ;;  %v798_v25 = vld [vmem:[%s3946_s4 + $0x308] sm:$0xff] }
  0xb1   : > { %1322 = vmatpush.msrb.mxu0 %v748_v39  ;;  %1342 = vmatpush.msrb.mxu1 %v764_v40  ;;  %v808_v38 = vld [vmem:[%s3946_s4 + $0x358] sm:$0xff]  ;;  %v775_v40 = vld [vmem:[%s3946_s4 + $0x250] sm:$0xff] }
  0xb2   : > { %1315 = vmatpush.msra.mxu3 %v719_v10  ;;  %1364 = vmatpush.msrb.mxu2 %v778_v29  ;;  %v824_v39 = vld [vmem:[%s3946_s4 + $0x3d8] sm:$0xff]  ;;  %v781_v29 = vld [vmem:[%s3946_s4 + $0x280] sm:$0xff] }
  0xb3   : > { %1323 = vmatpush.msrb.mxu0 %v747_v43  ;;  %1343 = vmatpush.msrb.mxu1 %v763_v44  ;;  %v823_v43 = vld [vmem:[%s3946_s4 + $0x3d0] sm:$0xff]  ;;  %v774_v44 = vld [vmem:[%s3946_s4 + $0x248] sm:$0xff] }
  0xb4   : > { %1316 = vmatpush.msra.mxu3 %v718_v14  ;;  %1365 = vmatpush.msrb.mxu2 %v777_v33 }
  0xb5   : > { %1324 = vmatpush.msrb.mxu0 %v746_v46  ;;  %1344 = vmatpush.msrb.mxu1 %v762_v47  ;;  %v806_v46 = vld [vmem:[%s3946_s4 + $0x348] sm:$0xff] }
  0xb6   : > { %1317 = vmatpush.msra.mxu3 %v717_v18  ;;  %1366 = vmatpush.msrb.mxu2 %v776_v36  ;;  %v822_v47 = vld [vmem:[%s3946_s4 + $0x3c8] sm:$0xff]  ;;  %v816_v18 = vld [vmem:[%s3946_s4 + $0x398] sm:$0xff] }
  0xb7   : > { %1325 = vmatpush.msrb.mxu0 %v745_v48  ;;  %1345 = vmatpush.msrb.mxu1 %v761_v49  ;;  %v773_v48 = vld [vmem:[%s3946_s4 + $0x240] sm:$0xff] }
  0xb8   : > { %2050 = vmatmul.msk.f32.gmra.mxu0 %vm539_vm8, %v508_v50  ;;  %2052 = vmatmul.msk.f32.gmra.mxu1 %vm539_vm8, %v508_v50  ;;  %v789_v49 = vld [vmem:[%s3946_s4 + $0x2c0] sm:$0xff] }
  0xb9   : > { %1326 = vmatpush.msrb.mxu0 %v744_v51  ;;  %1346 = vmatpush.msrb.mxu1 %v760_v52  ;;  %v805_v50 = vld [vmem:[%s3946_s4 + $0x340] sm:$0xff]  ;;  %v532_v51 = vpop.permute.xlu1 %531 }
  0xba   : > { %1382 = vmatpush.msrb.mxu3 %v796_v22  ;;  %1367 = vmatpush.msrb.mxu2 %v775_v40  ;;  %v821_v52 = vld [vmem:[%s3946_s4 + $0x3c0] sm:$0xff]  ;;  %v815_v22 = vld [vmem:[%s3946_s4 + $0x390] sm:$0xff]  ;;  %v860_v40 = vld [vmem:[%s3946_s4 + $0x4f8] sm:$0xff] }
  0xbb   : > { %1327 = vmatpush.msrb.mxu0 %v743_v53  ;;  %1347 = vmatpush.msrb.mxu1 %v759_v54  ;;  %v772_v53 = vld [vmem:[%s3946_s4 + $0x238] sm:$0xff] }
  0xbc   : > { %1383 = vmatpush.msrb.mxu3 %v795_v26  ;;  %1368 = vmatpush.msrb.mxu2 %v774_v44  ;;  %v788_v54 = vld [vmem:[%s3946_s4 + $0x2b8] sm:$0xff]  ;;  %v814_v26 = vld [vmem:[%s3946_s4 + $0x388] sm:$0xff]  ;;  %v859_v44 = vld [vmem:[%s3946_s4 + $0x4f0] sm:$0xff] }
  0xbd   : > { %1328 = vmatpush.msrb.mxu0 %v742_v55  ;;  %1348 = vmatpush.msrb.mxu1 %v758_v56  ;;  %v804_v55 = vld [vmem:[%s3946_s4 + $0x338] sm:$0xff] }
  0xbe   : > { %1384 = vmatpush.msrb.mxu3 %v794_v30  ;;  %1369 = vmatpush.msrb.mxu2 %v773_v48  ;;  %v797_v30 = vld [vmem:[%s3946_s4 + $0x300] sm:$0xff]  ;;  %v858_v48 = vld [vmem:[%s3946_s4 + $0x4e8] sm:$0xff] }
  0xbf   : > { %1329 = vmatpush.msrb.mxu0 %v741_v57  ;;  %1349 = vmatpush.msrb.mxu1 %v757_v58  ;;  %v820_v58 = vld [vmem:[%s3946_s4 + $0x3b8] sm:$0xff] }
  0xc0   : > { %1385 = vmatpush.msrb.mxu3 %v793_v7  ;;  %1370 = vmatpush.msrb.mxu2 %v772_v53  ;;  %v857_v53 = vld [vmem:[%s3946_s4 + $0x4e0] sm:$0xff] }
  0xc1   : > { %1330 = vmatpush.msrb.mxu0 %v740_v59  ;;  %1350 = vmatpush.msrb.mxu1 %v756_v60 }
  0xc2   : > { %1386 = vmatpush.msrb.mxu3 %v792_v37 }
  0xc3   : > { %1331 = vmatpush.msrb.mxu0 %v739_v61  ;;  %1351 = vmatpush.msrb.mxu1 %v755_v62  ;;  %v771_v61 = vld [vmem:[%s3946_s4 + $0x230] sm:$0xff] }
  0xc4   : > { %1387 = vmatpush.msrb.mxu3 %v791_v41  ;;  %v787_v62 = vld [vmem:[%s3946_s4 + $0x2b0] sm:$0xff]  ;;  %1371 = vmatpush.msrb.mxu2 %v771_v61  ;;  %v876_v41 = vld [vmem:[%s3946_s4 + $0x578] sm:$0xff] }
  0xc5   : > { %1332 = vmatpush.msrb.mxu0 %v738_v63  ;;  %1352 = vmatpush.msrb.mxu1 %v754_v0  ;;  %v803_v63 = vld [vmem:[%s3946_s4 + $0x330] sm:$0xff]  ;;  %v856_v61 = vld [vmem:[%s3946_s4 + $0x4d8] sm:$0xff] }
  0xc6   : > { %1388 = vmatpush.msrb.mxu3 %v790_v45  ;;  %v819_v0 = vld [vmem:[%s3946_s4 + $0x3b0] sm:$0xff]  ;;  %1372 = vmatpush.msrb.mxu2 %v770_v3 }
  0xc7   : > { %1333 = vmatpush.msrb.mxu0 %v737_v1  ;;  %1353 = vmatpush.msrb.mxu1 %v753_v2  ;;  %v875_v45 = vld [vmem:[%s3946_s4 + $0x570] sm:$0xff] }
  0xc8   : > { %1389 = vmatpush.msrb.mxu3 %v789_v49  ;;  %v874_v49 = vld [vmem:[%s3946_s4 + $0x568] sm:$0xff]  ;;  %v855_v3 = vld [vmem:[%s3946_s4 + $0x4d0] sm:$0xff] }
  0xc9   : > { %1334 = vmatpush.msrb.mxu0 %v736_v6  ;;  %1354 = vmatpush.msrb.mxu1 %v752_v8  ;;  %v802_v6 = vld [vmem:[%s3946_s4 + $0x328] sm:$0xff] }
  0xca   : > { %1390 = vmatpush.msrb.mxu3 %v788_v54  ;;  %v818_v8 = vld [vmem:[%s3946_s4 + $0x3a8] sm:$0xff]  ;;  %v873_v54 = vld [vmem:[%s3946_s4 + $0x560] sm:$0xff] }
  0xcb   : > { %1335 = vmatpush.msrb.mxu0 %v735_v11  ;;  %1355 = vmatpush.msrb.mxu1 %v751_v12  ;;  %v769_v11 = vld [vmem:[%s3946_s4 + $0x220] sm:$0xff] }
  0xcc   : > { %1391 = vmatpush.msrb.mxu3 %v787_v62  ;;  %v785_v12 = vld [vmem:[%s3946_s4 + $0x2a0] sm:$0xff]  ;;  %1373 = vmatpush.msrb.mxu2 %v769_v11  ;;  %v872_v62 = vld [vmem:[%s3946_s4 + $0x558] sm:$0xff] }
  0xcd   : > { %1336 = vmatpush.msrb.mxu0 %v734_v15  ;;  %1356 = vmatpush.msrb.mxu1 %v750_v16  ;;  %v768_v15 = vld [vmem:[%s3946_s4 + $0x218] sm:$0xff] }
  0xce   : > { %1392 = vmatpush.msrb.mxu3 %v786_v5  ;;  %v784_v16 = vld [vmem:[%s3946_s4 + $0x298] sm:$0xff]  ;;  %1374 = vmatpush.msrb.mxu2 %v768_v15 }
  0xcf   : > { %1337 = vmatpush.msrb.mxu0 %v733_v19  ;;  %1357 = vmatpush.msrb.mxu1 %v749_v20  ;;  %v767_v19 = vld [vmem:[%s3946_s4 + $0x210] sm:$0xff] }
  0xd0   : > { %1393 = vmatpush.msrb.mxu3 %v785_v12  ;;  %v783_v20 = vld [vmem:[%s3946_s4 + $0x290] sm:$0xff]  ;;  %1375 = vmatpush.msrb.mxu2 %v767_v19  ;;  %v537_v5 = vpop.permute.xlu2 %536  ;;  %v838_v12 = vld [vmem:[%s3946_s4 + $0x448] sm:$0xff]  ;;  %v853_v19 = vld [vmem:[%s3946_s4 + $0x4c0] sm:$0xff] }
  0xd1   : > { %1402 = vmatpush.msra.mxu0 %v812_v23  ;;  %1422 = vmatpush.msra.mxu1 %v828_v24  ;;  %v766_v23 = vld [vmem:[%s3946_s4 + $0x208] sm:$0xff] }
  0xd2   : > { %1394 = vmatpush.msrb.mxu3 %v784_v16  ;;  %v782_v24 = vld [vmem:[%s3946_s4 + $0x288] sm:$0xff]  ;;  %1376 = vmatpush.msrb.mxu2 %v766_v23 }
  0xd3   : > { %1403 = vmatpush.msra.mxu0 %v811_v27  ;;  %1423 = vmatpush.msra.mxu1 %v827_v28  ;;  %v765_v28 = vld [vmem:[%s3946_s4 + $0x200] sm:$0xff]  ;;  %v870_v16 = vld [vmem:[%s3946_s4 + $0x548] sm:$0xff] }
  0xd4   : > { %1395 = vmatpush.msrb.mxu3 %v783_v20  ;;  %1377 = vmatpush.msrb.mxu2 %v765_v28  ;;  %v851_v28 = vld [vmem:[%s3946_s4 + $0x4b0] sm:$0xff] }
  0xd5   : > { %1404 = vmatpush.msra.mxu0 %v810_v31  ;;  %1424 = vmatpush.msra.mxu1 %v826_v32  ;;  %v813_v31 = vld [vmem:[%s3946_s4 + $0x380] sm:$0xff] }
  0xd6   : > { %1396 = vmatpush.msrb.mxu3 %v782_v24 }
  0xd7   : > { %1405 = vmatpush.msra.mxu0 %v809_v34  ;;  %1425 = vmatpush.msra.mxu1 %v825_v35 }
  0xd8   : > { %1397 = vmatpush.msrb.mxu3 %v781_v29 }
  0xd9   : > { %1406 = vmatpush.msra.mxu0 %v808_v38  ;;  %1426 = vmatpush.msra.mxu1 %v824_v39  ;;  %v844_v39 = vld [vmem:[%s3946_s4 + $0x478] sm:$0xff] }
  0xdb   : > { %1407 = vmatpush.msra.mxu0 %v807_v42  ;;  %1427 = vmatpush.msra.mxu1 %v823_v43  ;;  %v892_v42 = vld [vmem:[%s3946_s4 + $0x5f8] sm:$0xff]  ;;  %v843_v43 = vld [vmem:[%s3946_s4 + $0x470] sm:$0xff] }
  0xdd   : > { %1408 = vmatpush.msra.mxu0 %v806_v46  ;;  %1428 = vmatpush.msra.mxu1 %v822_v47  ;;  %v891_v46 = vld [vmem:[%s3946_s4 + $0x5f0] sm:$0xff]  ;;  %v842_v47 = vld [vmem:[%s3946_s4 + $0x468] sm:$0xff] }
  0xdf   : > { %1409 = vmatpush.msra.mxu0 %v805_v50  ;;  %1429 = vmatpush.msra.mxu1 %v821_v52  ;;  %v890_v50 = vld [vmem:[%s3946_s4 + $0x5e8] sm:$0xff]  ;;  %v841_v52 = vld [vmem:[%s3946_s4 + $0x460] sm:$0xff] }
  0xe1   : > { %1410 = vmatpush.msra.mxu0 %v804_v55  ;;  %1430 = vmatpush.msra.mxu1 %v820_v58  ;;  %v889_v55 = vld [vmem:[%s3946_s4 + $0x5e0] sm:$0xff] }
  0xe3   : > { %1411 = vmatpush.msra.mxu0 %v803_v63  ;;  %1431 = vmatpush.msra.mxu1 %v819_v0  ;;  %v888_v63 = vld [vmem:[%s3946_s4 + $0x5d8] sm:$0xff]  ;;  %v839_v0 = vld [vmem:[%s3946_s4 + $0x450] sm:$0xff] }
  0xe5   : > { %1412 = vmatpush.msra.mxu0 %v802_v6  ;;  %1432 = vmatpush.msra.mxu1 %v818_v8  ;;  %v871_v8 = vld [vmem:[%s3946_s4 + $0x550] sm:$0xff] }
  0xe7   : > { %1413 = vmatpush.msra.mxu0 %v801_v4  ;;  %1433 = vmatpush.msra.mxu1 %v817_v13  ;;  %v854_v4 = vld [vmem:[%s3946_s4 + $0x4c8] sm:$0xff] }
  0xe9   : > { %1414 = vmatpush.msra.mxu0 %v800_v17  ;;  %1434 = vmatpush.msra.mxu1 %v816_v18  ;;  %v886_v17 = vld [vmem:[%s3946_s4 + $0x5c8] sm:$0xff]  ;;  %v837_v18 = vld [vmem:[%s3946_s4 + $0x440] sm:$0xff] }
  0xeb   : > { %1415 = vmatpush.msra.mxu0 %v799_v21  ;;  %1435 = vmatpush.msra.mxu1 %v815_v22  ;;  %v885_v21 = vld [vmem:[%s3946_s4 + $0x5c0] sm:$0xff]  ;;  %v836_v22 = vld [vmem:[%s3946_s4 + $0x438] sm:$0xff] }
  0xed   : > { %1416 = vmatpush.msra.mxu0 %v798_v25  ;;  %1436 = vmatpush.msra.mxu1 %v814_v26  ;;  %v868_v25 = vld [vmem:[%s3946_s4 + $0x538] sm:$0xff] }
  0xee   : > { %v884_v26 = vld [vmem:[%s3946_s4 + $0x5b8] sm:$0xff] }
  0xef   : > { %1417 = vmatpush.msra.mxu0 %v797_v30  ;;  %1437 = vmatpush.msra.mxu1 %v813_v31  ;;  %v867_v30 = vld [vmem:[%s3946_s4 + $0x530] sm:$0xff] }
  0xf0   : > { %v883_v31 = vld [vmem:[%s3946_s4 + $0x5b0] sm:$0xff] }
 0x12d   : > { %v563_v56 = vpop.f32.mrf.mxu0  ;;  %v586_v57 = vpop.f32.mrf.mxu1 }
 0x12e   : > { %v564_v59 = vadd.f32 %v563_v56, %v532_v51  ;;  %v587_v60 = vadd.f32 %v586_v57, %v532_v51 }
 0x130   : > { %v2560_v1 = vmax.f32 %v564_v59, 0.0  ;;  %v2562_v2 = vmax.f32 %v587_v60, 0.0  ;;  %v840_v60 = vld [vmem:[%s3946_s4 + $0x458] sm:$0xff] }
 0x132   : > { %607 = vst [vmem:[#allocation1] sm:$0xff] %v2560_v1  ;;  %v598_v10 = vrot.slane %v2562_v2, 7 }
 0x133   : > { %608 = vst [vmem:[#allocation1 + $0x9] sm:$0xff] %v2562_v2 }
 0x134   : > { %v600_v14 = vsel %vm599_vm9, %v2560_v1, %v598_v10  ;;  %v887_v10 = vld [vmem:[%s3946_s4 + $0x5d0] sm:$0xff] }
 0x135   : > { %606 = vst.msk [vmem:[#allocation3] sm:$0x3] %vm2577_vm10, %v600_v14  ;;  %v566_v6 = vpop.f32.mrf.mxu0  ;;  %v589_v11 = vpop.f32.mrf.mxu1 }
 0x136   : > { %v567_v13 = vadd.f32 %v566_v6, %v537_v5  ;;  %v590_v14 = vadd.f32 %v589_v11, %v537_v5  ;;  %v907_v5 = vld [vmem:[%s3946_s4 + $0x670] sm:$0xff]  ;;  %v906_v11 = vld [vmem:[%s3946_s4 + $0x668] sm:$0xff] }
 0x137   : > { %v923_v6 = vld [vmem:[%s3946_s4 + $0x6f0] sm:$0xff] }
 0x138   : > { %v2759_v20 = vmax.f32 %v590_v14, 0.0  ;;  %v2776_v23 = vmax.f32 %v567_v13, 0.0  ;;  %v954_v13 = vld [vmem:[%s3946_s4 + $0x7e8] sm:$0xff]  ;;  %v905_v14 = vld [vmem:[%s3946_s4 + $0x660] sm:$0xff] }
 0x13a   : > { %v610_v27 = vld [vmem:[#allocation1 + $0x1] ss:$9 sm:$0xff]  ;;  %v651_v24 = vrot.slane %v2759_v20, 7 }
 0x13b   : > { %613 = vst [vmem:[#allocation1] sm:$0xff] %v2560_v1 }
 0x13c   : > { %614 = vst [vmem:[#allocation1 + $0x9] sm:$0xff] %v2562_v2  ;;  %v652_v29 = vsel %vm599_vm9, %v2776_v23, %v651_v24  ;;  %v919_v24 = vld [vmem:[%s3946_s4 + $0x6d0] sm:$0xff] }
 0x13d   : > { %612 = vst.msk [vmem:[#allocation3 + $0x2] sm:$0x3] %vm2577_vm10, %v610_v27  ;;  %v835_v27 = vld [vmem:[%s3946_s4 + $0x430] sm:$0xff] }
 0x13e   : > { %654 = vst.msk [vmem:[#allocation3 + $0x10] sm:$0x3] %vm2577_vm10, %v652_v29  ;;  %v934_v29 = vld [vmem:[%s3946_s4 + $0x748] sm:$0xff] }
 0x143   : > { %v616_v32 = vld [vmem:[#allocation1 + $0x2] ss:$9 sm:$0xff] }
 0x144   : > { %619 = vst [vmem:[#allocation1] sm:$0xff] %v2560_v1 }
 0x145   : > { %620 = vst [vmem:[#allocation1 + $0x9] sm:$0xff] %v2562_v2 }
 0x146   : > { %618 = vst.msk [vmem:[#allocation3 + $0x4] sm:$0x3] %vm2577_vm10, %v616_v32  ;;  %v834_v32 = vld [vmem:[%s3946_s4 + $0x428] sm:$0xff] }
 0x14c   : > { %v622_v33 = vld [vmem:[#allocation1 + $0x3] ss:$9 sm:$0xff] }
 0x14d   : > { %625 = vst [vmem:[#allocation1] sm:$0xff] %v2560_v1 }
 0x14e   : > { %626 = vst [vmem:[#allocation1 + $0x9] sm:$0xff] %v2562_v2 }
 0x14f   : > { %624 = vst.msk [vmem:[#allocation3 + $0x6] sm:$0x3] %vm2577_vm10, %v622_v33  ;;  %v850_v33 = vld [vmem:[%s3946_s4 + $0x4a8] sm:$0xff] }
 0x155   : > { %v628_v7 = vld [vmem:[#allocation1 + $0x4] ss:$9 sm:$0xff] }
 0x156   : > { %631 = vst [vmem:[#allocation1] sm:$0xff] %v2560_v1  ;;  %v697_v34 = vld [vmem:[#allocation3] sm:$0xff] }
 0x157   : > { %632 = vst [vmem:[#allocation1 + $0x9] sm:$0xff] %v2562_v2  ;;  %v1218_v35 = vperm.slane %v697_v34, 0  ;;  %v1219_v36 = vperm.slane %v697_v34, 1  ;;  %v1220_v37 = vperm.slane %v697_v34, 2  ;;  %v1221_v38 = vperm.slane %v697_v34, 3 }
 0x158   : > { %630 = vst.msk [vmem:[#allocation3 + $0x8] sm:$0x3] %vm2577_vm10, %v628_v7  ;;  %v1222_v56 = vperm.slane %v697_v34, 4  ;;  %v1223_v57 = vperm.slane %v697_v34, 5  ;;  %v1224_v58 = vperm.slane %v697_v34, 6  ;;  %v1225_v59 = vperm.slane %v697_v34, 7 }
 0x159   : > { %1298 = vmatmul.f32.vlgmr.msra.gmra.mxu2 %v1218_v35  ;;  %1318 = vmatmul.f32.vlgmr.msra.gmra.mxu3 %v1219_v36  ;;  %v866_v7 = vld [vmem:[%s3946_s4 + $0x528] sm:$0xff]  ;;  %v833_v36 = vld [vmem:[%s3946_s4 + $0x420] sm:$0xff] }
 0x15a   : > { %1338 = vmatmul.f32.vlgmr.msrb.gmra.mxu0 %v1220_v37  ;;  %1358 = vmatmul.f32.vlgmr.msrb.gmra.mxu1 %v1221_v38  ;;  %v882_v34 = vld [vmem:[%s3946_s4 + $0x5a8] sm:$0xff]  ;;  %v849_v37 = vld [vmem:[%s3946_s4 + $0x4a0] sm:$0xff] }
 0x15b   : > { %1442 = vmatpush.msra.mxu2 %v844_v39  ;;  %1462 = vmatpush.msra.mxu3 %v860_v40  ;;  %v865_v38 = vld [vmem:[%s3946_s4 + $0x520] sm:$0xff]  ;;  %v832_v40 = vld [vmem:[%s3946_s4 + $0x418] sm:$0xff] }
 0x15c   : > { %1482 = vmatpush.msrb.mxu0 %v876_v41  ;;  %1502 = vmatpush.msrb.mxu1 %v892_v42  ;;  %v881_v39 = vld [vmem:[%s3946_s4 + $0x5a0] sm:$0xff]  ;;  %v848_v41 = vld [vmem:[%s3946_s4 + $0x498] sm:$0xff] }
 0x15d   : > { %1443 = vmatpush.msra.mxu2 %v843_v43  ;;  %1463 = vmatpush.msra.mxu3 %v859_v44  ;;  %v864_v42 = vld [vmem:[%s3946_s4 + $0x518] sm:$0xff]  ;;  %v831_v44 = vld [vmem:[%s3946_s4 + $0x410] sm:$0xff] }
 0x15e   : > { %v634_v51 = vld [vmem:[#allocation1 + $0x5] ss:$9 sm:$0xff]  ;;  %1483 = vmatpush.msrb.mxu0 %v875_v45  ;;  %1503 = vmatpush.msrb.mxu1 %v891_v46 }
 0x15f   : > { %637 = vst [vmem:[#allocation1] sm:$0xff] %v2560_v1  ;;  %1444 = vmatpush.msra.mxu2 %v842_v47  ;;  %1464 = vmatpush.msra.mxu3 %v858_v48  ;;  %v880_v43 = vld [vmem:[%s3946_s4 + $0x598] sm:$0xff]  ;;  %v847_v45 = vld [vmem:[%s3946_s4 + $0x490] sm:$0xff]  ;;  %v830_v48 = vld [vmem:[%s3946_s4 + $0x408] sm:$0xff] }
 0x160   : > { %638 = vst [vmem:[#allocation1 + $0x9] sm:$0xff] %v2562_v2  ;;  %1484 = vmatpush.msrb.mxu0 %v874_v49  ;;  %1504 = vmatpush.msrb.mxu1 %v890_v50  ;;  %v863_v46 = vld [vmem:[%s3946_s4 + $0x510] sm:$0xff]  ;;  %v846_v49 = vld [vmem:[%s3946_s4 + $0x488] sm:$0xff] }
 0x161   : > { %636 = vst.msk [vmem:[#allocation3 + $0xa] sm:$0x3] %vm2577_vm10, %v634_v51  ;;  %1445 = vmatpush.msra.mxu2 %v841_v52  ;;  %1465 = vmatpush.msra.mxu3 %v857_v53  ;;  %v879_v47 = vld [vmem:[%s3946_s4 + $0x590] sm:$0xff]  ;;  %v862_v50 = vld [vmem:[%s3946_s4 + $0x508] sm:$0xff]  ;;  %v829_v52 = vld [vmem:[%s3946_s4 + $0x400] sm:$0xff] }
 0x162   : > { %1485 = vmatpush.msrb.mxu0 %v873_v54  ;;  %1505 = vmatpush.msrb.mxu1 %v889_v55  ;;  %v878_v51 = vld [vmem:[%s3946_s4 + $0x588] sm:$0xff]  ;;  %v845_v53 = vld [vmem:[%s3946_s4 + $0x480] sm:$0xff] }
 0x163   : > { %1378 = vmatmul.f32.vlgmr.msrb.gmra.mxu2 %v1222_v56  ;;  %1398 = vmatmul.f32.vlgmr.msrb.gmra.mxu3 %v1223_v57  ;;  %v861_v55 = vld [vmem:[%s3946_s4 + $0x500] sm:$0xff]  ;;  %v908_v57 = vld [vmem:[%s3946_s4 + $0x678] sm:$0xff] }
 0x164   : > { %1418 = vmatmul.f32.vlgmr.msra.gmra.mxu0 %v1224_v58  ;;  %1438 = vmatmul.f32.vlgmr.msra.gmra.mxu1 %v1225_v59  ;;  %v877_v56 = vld [vmem:[%s3946_s4 + $0x580] sm:$0xff]  ;;  %v924_v58 = vld [vmem:[%s3946_s4 + $0x6f8] sm:$0xff] }
 0x165   : > { %1446 = vmatpush.msra.mxu2 %v840_v60  ;;  %1466 = vmatpush.msra.mxu3 %v856_v61  ;;  %v940_v60 = vld [vmem:[%s3946_s4 + $0x778] sm:$0xff] }
 0x166   : > { %1486 = vmatpush.msrb.mxu0 %v872_v62  ;;  %1506 = vmatpush.msrb.mxu1 %v888_v63  ;;  %v956_v61 = vld [vmem:[%s3946_s4 + $0x7f8] sm:$0xff] }
 0x167   : > { %v640_v15 = vld [vmem:[#allocation1 + $0x6] ss:$9 sm:$0xff]  ;;  %1447 = vmatpush.msra.mxu2 %v839_v0  ;;  %1467 = vmatpush.msra.mxu3 %v855_v3 }
 0x168   : > { %643 = vst [vmem:[#allocation1] sm:$0xff] %v2560_v1  ;;  %1487 = vmatpush.msrb.mxu0 %v871_v8  ;;  %1507 = vmatpush.msrb.mxu1 %v887_v10  ;;  %v869_v1 = vld [vmem:[%s3946_s4 + $0x540] sm:$0xff]  ;;  %v939_v8 = vld [vmem:[%s3946_s4 + $0x770] sm:$0xff] }
 0x169   : > { %644 = vst [vmem:[#allocation1 + $0x9] sm:$0xff] %v2562_v2  ;;  %1448 = vmatpush.msra.mxu2 %v838_v12  ;;  %1468 = vmatpush.msra.mxu3 %v854_v4  ;;  %v852_v2 = vld [vmem:[%s3946_s4 + $0x4b8] sm:$0xff]  ;;  %v955_v10 = vld [vmem:[%s3946_s4 + $0x7f0] sm:$0xff]  ;;  %v922_v12 = vld [vmem:[%s3946_s4 + $0x6e8] sm:$0xff] }
 0x16a   : > { %642 = vst.msk [vmem:[#allocation3 + $0xc] sm:$0x3] %vm2577_vm10, %v640_v15  ;;  %1488 = vmatpush.msrb.mxu0 %v870_v16  ;;  %1508 = vmatpush.msrb.mxu1 %v886_v17  ;;  %v938_v4 = vld [vmem:[%s3946_s4 + $0x768] sm:$0xff]  ;;  %v921_v15 = vld [vmem:[%s3946_s4 + $0x6e0] sm:$0xff] }
 0x16b   : > { %1449 = vmatpush.msra.mxu2 %v837_v18  ;;  %1469 = vmatpush.msra.mxu3 %v853_v19  ;;  %v937_v17 = vld [vmem:[%s3946_s4 + $0x760] sm:$0xff]  ;;  %v904_v19 = vld [vmem:[%s3946_s4 + $0x658] sm:$0xff] }
 0x16c   : > { %1489 = vmatpush.msrb.mxu0 %v869_v1  ;;  %1509 = vmatpush.msrb.mxu1 %v885_v21  ;;  %v953_v18 = vld [vmem:[%s3946_s4 + $0x7e0] sm:$0xff]  ;;  %v920_v1 = vld [vmem:[%s3946_s4 + $0x6d8] sm:$0xff] }
 0x16d   : > { %1450 = vmatpush.msra.mxu2 %v836_v22  ;;  %1470 = vmatpush.msra.mxu3 %v852_v2  ;;  %v936_v21 = vld [vmem:[%s3946_s4 + $0x758] sm:$0xff]  ;;  %v903_v2 = vld [vmem:[%s3946_s4 + $0x650] sm:$0xff] }
 0x16e   : > { %1490 = vmatpush.msrb.mxu0 %v868_v25  ;;  %1510 = vmatpush.msrb.mxu1 %v884_v26  ;;  %v952_v22 = vld [vmem:[%s3946_s4 + $0x7d8] sm:$0xff]  ;;  %v935_v25 = vld [vmem:[%s3946_s4 + $0x750] sm:$0xff] }
 0x16f   : > { %1451 = vmatpush.msra.mxu2 %v835_v27  ;;  %1471 = vmatpush.msra.mxu3 %v851_v28  ;;  %v951_v26 = vld [vmem:[%s3946_s4 + $0x7d0] sm:$0xff]  ;;  %v902_v27 = vld [vmem:[%s3946_s4 + $0x648] sm:$0xff] }
 0x170   : > { %v646_v35 = vld [vmem:[#allocation1 + $0x7] ss:$9 sm:$0xff]  ;;  %1491 = vmatpush.msrb.mxu0 %v867_v30  ;;  %1511 = vmatpush.msrb.mxu1 %v883_v31 }
 0x171   : > { %648 = vst.msk [vmem:[#allocation3 + $0xe] sm:$0x3] %vm2577_vm10, %v646_v35  ;;  %1452 = vmatpush.msra.mxu2 %v834_v32  ;;  %1472 = vmatpush.msra.mxu3 %v850_v33  ;;  %v918_v28 = vld [vmem:[%s3946_s4 + $0x6c8] sm:$0xff]  ;;  %v901_v31 = vld [vmem:[%s3946_s4 + $0x640] sm:$0xff]  ;;  %v900_v35 = vld [vmem:[%s3946_s4 + $0x638] sm:$0xff] }
 0x172   : > { %1492 = vmatpush.msrb.mxu0 %v866_v7  ;;  %1512 = vmatpush.msrb.mxu1 %v882_v34  ;;  %655 = vst [vmem:[#allocation1] sm:$0xff] %v2776_v23  ;;  %v950_v30 = vld [vmem:[%s3946_s4 + $0x7c8] sm:$0xff]  ;;  %v917_v32 = vld [vmem:[%s3946_s4 + $0x6c0] sm:$0xff] }
 0x173   : > { %1453 = vmatpush.msra.mxu2 %v833_v36  ;;  %1473 = vmatpush.msra.mxu3 %v849_v37  ;;  %656 = vst [vmem:[#allocation1 + $0x9] sm:$0xff] %v2759_v20  ;;  %v933_v33 = vld [vmem:[%s3946_s4 + $0x740] sm:$0xff]  ;;  %v916_v36 = vld [vmem:[%s3946_s4 + $0x6b8] sm:$0xff] }
 0x174   : > { %1493 = vmatpush.msrb.mxu0 %v865_v38  ;;  %1513 = vmatpush.msrb.mxu1 %v881_v39  ;;  %v949_v7 = vld [vmem:[%s3946_s4 + $0x7c0] sm:$0xff]  ;;  %v932_v37 = vld [vmem:[%s3946_s4 + $0x738] sm:$0xff]  ;;  %v899_v39 = vld [vmem:[%s3946_s4 + $0x630] sm:$0xff] }
 0x175   : > { %1454 = vmatpush.msra.mxu2 %v832_v40  ;;  %1474 = vmatpush.msra.mxu3 %v848_v41  ;;  %v948_v38 = vld [vmem:[%s3946_s4 + $0x7b8] sm:$0xff]  ;;  %v915_v40 = vld [vmem:[%s3946_s4 + $0x6b0] sm:$0xff] }
 0x176   : > { %1494 = vmatpush.msrb.mxu0 %v864_v42  ;;  %1514 = vmatpush.msrb.mxu1 %v880_v43  ;;  %v931_v41 = vld [vmem:[%s3946_s4 + $0x730] sm:$0xff]  ;;  %v898_v43 = vld [vmem:[%s3946_s4 + $0x628] sm:$0xff] }
 0x177   : > { %1455 = vmatpush.msra.mxu2 %v831_v44  ;;  %1475 = vmatpush.msra.mxu3 %v847_v45  ;;  %v947_v42 = vld [vmem:[%s3946_s4 + $0x7b0] sm:$0xff]  ;;  %v914_v44 = vld [vmem:[%s3946_s4 + $0x6a8] sm:$0xff] }
 0x178   : > { %1495 = vmatpush.msrb.mxu0 %v863_v46  ;;  %1515 = vmatpush.msrb.mxu1 %v879_v47  ;;  %v2871_v54 = vld [vmem:[#allocation3 + $0x8] sm:$0xff]  ;;  %v930_v45 = vld [vmem:[%s3946_s4 + $0x728] sm:$0xff]  ;;  %v897_v47 = vld [vmem:[%s3946_s4 + $0x620] sm:$0xff] }
 0x179   : > { %1456 = vmatpush.msra.mxu2 %v830_v48  ;;  %1476 = vmatpush.msra.mxu3 %v846_v49  ;;  %v1226_v62 = vperm.slane %v2871_v54, 0  ;;  %v1227_v63 = vperm.slane %v2871_v54, 1  ;;  %v1228_v0 = vperm.slane %v2871_v54, 2  ;;  %v1229_v3 = vperm.slane %v2871_v54, 3  ;;  %v946_v46 = vld [vmem:[%s3946_s4 + $0x7a8] sm:$0xff]  ;;  %v913_v48 = vld [vmem:[%s3946_s4 + $0x6a0] sm:$0xff] }
 0x17a   : > { %1496 = vmatpush.msrb.mxu0 %v862_v50  ;;  %1516 = vmatpush.msrb.mxu1 %v878_v51  ;;  %v658_v59 = vld [vmem:[#allocation1 + $0x1] ss:$9 sm:$0xff] }
 0x17b   : > { %1457 = vmatpush.msra.mxu2 %v829_v52  ;;  %1477 = vmatpush.msra.mxu3 %v845_v53  ;;  %661 = vst [vmem:[#allocation1] sm:$0xff] %v2776_v23  ;;  %v929_v49 = vld [vmem:[%s3946_s4 + $0x720] sm:$0xff]  ;;  %v896_v51 = vld [vmem:[%s3946_s4 + $0x618] sm:$0xff] }
 0x17c   : > { %1497 = vmatpush.msrb.mxu0 %v861_v55  ;;  %1517 = vmatpush.msrb.mxu1 %v877_v56  ;;  %662 = vst [vmem:[#allocation1 + $0x9] sm:$0xff] %v2759_v20  ;;  %v945_v50 = vld [vmem:[%s3946_s4 + $0x7a0] sm:$0xff]  ;;  %v912_v52 = vld [vmem:[%s3946_s4 + $0x698] sm:$0xff]  ;;  %v895_v56 = vld [vmem:[%s3946_s4 + $0x610] sm:$0xff] }
 0x17d   : > { %1522 = vmatpush.msrb.mxu2 %v908_v57  ;;  %1542 = vmatpush.msrb.mxu3 %v924_v58  ;;  %660 = vst.msk [vmem:[#allocation3 + $0x12] sm:$0x3] %vm2577_vm10, %v658_v59  ;;  %v928_v53 = vld [vmem:[%s3946_s4 + $0x718] sm:$0xff]  ;;  %v911_v57 = vld [vmem:[%s3946_s4 + $0x690] sm:$0xff] }
 0x17e   : > { %1562 = vmatpush.msra.mxu0 %v940_v60  ;;  %1582 = vmatpush.msra.mxu1 %v956_v61  ;;  %v944_v55 = vld [vmem:[%s3946_s4 + $0x798] sm:$0xff]  ;;  %v927_v59 = vld [vmem:[%s3946_s4 + $0x710] sm:$0xff]  ;;  %v894_v61 = vld [vmem:[%s3946_s4 + $0x608] sm:$0xff] }
 0x17f   : > { %1458 = vmatmul.f32.vlgmr.msra.gmra.mxu2 %v1226_v62  ;;  %1478 = vmatmul.f32.vlgmr.msra.gmra.mxu3 %v1227_v63  ;;  %v943_v60 = vld [vmem:[%s3946_s4 + $0x790] sm:$0xff]  ;;  %v910_v62 = vld [vmem:[%s3946_s4 + $0x688] sm:$0xff] }
 0x180   : > { %1498 = vmatmul.f32.vlgmr.msrb.gmra.mxu0 %v1228_v0  ;;  %1518 = vmatmul.f32.vlgmr.msrb.gmra.mxu1 %v1229_v3  ;;  %v926_v63 = vld [vmem:[%s3946_s4 + $0x708] sm:$0xff]  ;;  %v893_v3 = vld [vmem:[%s3946_s4 + $0x600] sm:$0xff] }
 0x181   : > { %1523 = vmatpush.msrb.mxu2 %v907_v5  ;;  %1543 = vmatpush.msrb.mxu3 %v923_v6  ;;  %v942_v0 = vld [vmem:[%s3946_s4 + $0x788] sm:$0xff]  ;;  %v909_v5 = vld [vmem:[%s3946_s4 + $0x680] sm:$0xff] }
 0x182   : > { %1563 = vmatpush.msra.mxu0 %v939_v8  ;;  %1583 = vmatpush.msra.mxu1 %v955_v10  ;;  %v925_v6 = vld [vmem:[%s3946_s4 + $0x700] sm:$0xff]  ;;  %v1230_v10 = vperm.slane %v2871_v54, 4 }
 0x183   : > { %1524 = vmatpush.msrb.mxu2 %v906_v11  ;;  %1544 = vmatpush.msrb.mxu3 %v922_v12  ;;  %v664_v16 = vld [vmem:[#allocation1 + $0x2] ss:$9 sm:$0xff]  ;;  %v1231_v11 = vperm.slane %v2871_v54, 5  ;;  %v1232_v12 = vperm.slane %v2871_v54, 6 }
 0x184   : > { %1564 = vmatpush.msra.mxu0 %v938_v4  ;;  %1584 = vmatpush.msra.mxu1 %v954_v13  ;;  %667 = vst [vmem:[#allocation1] sm:$0xff] %v2776_v23  ;;  %v941_v8 = vld [vmem:[%s3946_s4 + $0x780] sm:$0xff]  ;;  %v1233_v4 = vperm.slane %v2871_v54, 7  ;;  %v972_v13 = vld [vmem:[%s3946_s4 + $0x878] sm:$0xff]  ;;  %v971_v54 = vld [vmem:[%s3946_s4 + $0x870] sm:$0xff] }
 0x185   : > { %668 = vst [vmem:[#allocation1 + $0x9] sm:$0xff] %v2759_v20  ;;  %1525 = vmatpush.msrb.mxu2 %v905_v14  ;;  %1545 = vmatpush.msrb.mxu3 %v921_v15  ;;  %v988_v14 = vld [vmem:[%s3946_s4 + $0x8f8] sm:$0xff] }
 0x186   : > { %666 = vst.msk [vmem:[#allocation3 + $0x14] sm:$0x3] %vm2577_vm10, %v664_v16  ;;  %1565 = vmatpush.msra.mxu0 %v937_v17  ;;  %1585 = vmatpush.msra.mxu1 %v953_v18  ;;  %v1004_v15 = vld [vmem:[%s3946_s4 + $0x978] sm:$0xff]  ;;  %v987_v17 = vld [vmem:[%s3946_s4 + $0x8f0] sm:$0xff] }
 0x187   : > { %1526 = vmatpush.msrb.mxu2 %v904_v19  ;;  %1546 = vmatpush.msrb.mxu3 %v920_v1  ;;  %v1020_v16 = vld [vmem:[%s3946_s4 + $0x9f8] sm:$0xff]  ;;  %v1003_v19 = vld [vmem:[%s3946_s4 + $0x970] sm:$0xff] }
 0x188   : > { %1566 = vmatpush.msra.mxu0 %v936_v21  ;;  %1586 = vmatpush.msra.mxu1 %v952_v22  ;;  %v1019_v1 = vld [vmem:[%s3946_s4 + $0x9f0] sm:$0xff]  ;;  %v970_v21 = vld [vmem:[%s3946_s4 + $0x868] sm:$0xff] }
 0x189   : > { %1527 = vmatpush.msrb.mxu2 %v903_v2  ;;  %1547 = vmatpush.msrb.mxu3 %v919_v24  ;;  %v986_v22 = vld [vmem:[%s3946_s4 + $0x8e8] sm:$0xff] }
 0x18a   : > { %1567 = vmatpush.msra.mxu0 %v935_v25  ;;  %1587 = vmatpush.msra.mxu1 %v951_v26  ;;  %v1002_v2 = vld [vmem:[%s3946_s4 + $0x968] sm:$0xff]  ;;  %v969_v25 = vld [vmem:[%s3946_s4 + $0x860] sm:$0xff] }
 0x18b   : > { %1528 = vmatpush.msrb.mxu2 %v902_v27  ;;  %1548 = vmatpush.msrb.mxu3 %v918_v28  ;;  %v1018_v24 = vld [vmem:[%s3946_s4 + $0x9e8] sm:$0xff]  ;;  %v985_v26 = vld [vmem:[%s3946_s4 + $0x8e0] sm:$0xff] }
 0x18c   : > { %v670_v34 = vld [vmem:[#allocation1 + $0x3] ss:$9 sm:$0xff]  ;;  %1568 = vmatpush.msra.mxu0 %v934_v29  ;;  %1588 = vmatpush.msra.mxu1 %v950_v30 }
 0x18d   : > { %674 = vst [vmem:[#allocation1 + $0x9] sm:$0xff] %v2759_v20  ;;  %1529 = vmatpush.msrb.mxu2 %v901_v31  ;;  %1549 = vmatpush.msrb.mxu3 %v917_v32  ;;  %v1001_v27 = vld [vmem:[%s3946_s4 + $0x960] sm:$0xff]  ;;  %v968_v29 = vld [vmem:[%s3946_s4 + $0x858] sm:$0xff] }
 0x18e   : > { %672 = vst.msk [vmem:[#allocation3 + $0x16] sm:$0x3] %vm2577_vm10, %v670_v34  ;;  %1569 = vmatpush.msra.mxu0 %v933_v33  ;;  %1589 = vmatpush.msra.mxu1 %v949_v7  ;;  %v1017_v28 = vld [vmem:[%s3946_s4 + $0x9e0] sm:$0xff]  ;;  %v984_v30 = vld [vmem:[%s3946_s4 + $0x8d8] sm:$0xff]  ;;  %v967_v33 = vld [vmem:[%s3946_s4 + $0x850] sm:$0xff] }
 0x18f   : > { %673 = vst [vmem:[#allocation1] sm:$0xff] %v2776_v23  ;;  %1530 = vmatpush.msrb.mxu2 %v900_v35  ;;  %1550 = vmatpush.msrb.mxu3 %v916_v36  ;;  %v1000_v31 = vld [vmem:[%s3946_s4 + $0x958] sm:$0xff]  ;;  %v983_v7 = vld [vmem:[%s3946_s4 + $0x8d0] sm:$0xff]  ;;  %v966_v36 = vld [vmem:[%s3946_s4 + $0x848] sm:$0xff] }
 0x190   : > { %1570 = vmatpush.msra.mxu0 %v932_v37  ;;  %1590 = vmatpush.msra.mxu1 %v948_v38  ;;  %v1016_v32 = vld [vmem:[%s3946_s4 + $0x9d8] sm:$0xff]  ;;  %v999_v34 = vld [vmem:[%s3946_s4 + $0x950] sm:$0xff]  ;;  %v982_v37 = vld [vmem:[%s3946_s4 + $0x8c8] sm:$0xff] }
 0x191   : > { %1531 = vmatpush.msrb.mxu2 %v899_v39  ;;  %1551 = vmatpush.msrb.mxu3 %v915_v40  ;;  %v1015_v35 = vld [vmem:[%s3946_s4 + $0x9d0] sm:$0xff]  ;;  %v998_v38 = vld [vmem:[%s3946_s4 + $0x948] sm:$0xff] }
 0x192   : > { %1571 = vmatpush.msra.mxu0 %v931_v41  ;;  %1591 = vmatpush.msra.mxu1 %v947_v42  ;;  %v1014_v39 = vld [vmem:[%s3946_s4 + $0x9c8] sm:$0xff]  ;;  %v965_v41 = vld [vmem:[%s3946_s4 + $0x840] sm:$0xff] }
 0x193   : > { %1532 = vmatpush.msrb.mxu2 %v898_v43  ;;  %1552 = vmatpush.msrb.mxu3 %v914_v44  ;;  %v981_v42 = vld [vmem:[%s3946_s4 + $0x8c0] sm:$0xff] }
 0x194   : > { %1572 = vmatpush.msra.mxu0 %v930_v45  ;;  %1592 = vmatpush.msra.mxu1 %v946_v46  ;;  %v997_v43 = vld [vmem:[%s3946_s4 + $0x940] sm:$0xff]  ;;  %v964_v45 = vld [vmem:[%s3946_s4 + $0x838] sm:$0xff] }
 0x195   : > { %1533 = vmatpush.msrb.mxu2 %v897_v47  ;;  %1553 = vmatpush.msrb.mxu3 %v913_v48  ;;  %v1013_v44 = vld [vmem:[%s3946_s4 + $0x9c0] sm:$0xff]  ;;  %v980_v46 = vld [vmem:[%s3946_s4 + $0x8b8] sm:$0xff]  ;;  %v963_v48 = vld [vmem:[%s3946_s4 + $0x830] sm:$0xff] }
 0x196   : > { %1573 = vmatpush.msra.mxu0 %v929_v49  ;;  %1593 = vmatpush.msra.mxu1 %v945_v50  ;;  %v676_v58 = vld [vmem:[#allocation1 + $0x4] ss:$9 sm:$0xff] }
 0x197   : > { %1534 = vmatpush.msrb.mxu2 %v896_v51  ;;  %1554 = vmatpush.msrb.mxu3 %v912_v52  ;;  %678 = vst.msk [vmem:[#allocation3 + $0x18] sm:$0x3] %vm2577_vm10, %v676_v58  ;;  %v996_v47 = vld [vmem:[%s3946_s4 + $0x938] sm:$0xff]  ;;  %v995_v49 = vld [vmem:[%s3946_s4 + $0x930] sm:$0xff]  ;;  %v962_v51 = vld [vmem:[%s3946_s4 + $0x828] sm:$0xff] }
 0x198   : > { %1574 = vmatpush.msra.mxu0 %v928_v53  ;;  %1594 = vmatpush.msra.mxu1 %v944_v55  ;;  %679 = vst [vmem:[#allocation1] sm:$0xff] %v2776_v23  ;;  %v1011_v50 = vld [vmem:[%s3946_s4 + $0x9b0] sm:$0xff]  ;;  %v978_v52 = vld [vmem:[%s3946_s4 + $0x8a8] sm:$0xff]  ;;  %v993_v58 = vld [vmem:[%s3946_s4 + $0x920] sm:$0xff] }
 0x199   : > { %1535 = vmatpush.msrb.mxu2 %v895_v56  ;;  %1555 = vmatpush.msrb.mxu3 %v911_v57  ;;  %680 = vst [vmem:[#allocation1 + $0x9] sm:$0xff] %v2759_v20  ;;  %v994_v53 = vld [vmem:[%s3946_s4 + $0x928] sm:$0xff]  ;;  %v961_v56 = vld [vmem:[%s3946_s4 + $0x820] sm:$0xff] }
 0x19a   : > { %1575 = vmatpush.msra.mxu0 %v927_v59  ;;  %1595 = vmatpush.msra.mxu1 %v943_v60  ;;  %v1010_v55 = vld [vmem:[%s3946_s4 + $0x9a8] sm:$0xff]  ;;  %v977_v57 = vld [vmem:[%s3946_s4 + $0x8a0] sm:$0xff]  ;;  %v960_v60 = vld [vmem:[%s3946_s4 + $0x818] sm:$0xff] }
 0x19b   : > { %1536 = vmatpush.msrb.mxu2 %v894_v61  ;;  %1556 = vmatpush.msrb.mxu3 %v910_v62  ;;  %v1009_v59 = vld [vmem:[%s3946_s4 + $0x9a0] sm:$0xff]  ;;  %v976_v61 = vld [vmem:[%s3946_s4 + $0x898] sm:$0xff] }
 0x19c   : > { %1576 = vmatpush.msra.mxu0 %v926_v63  ;;  %1596 = vmatpush.msra.mxu1 %v942_v0  ;;  %v992_v63 = vld [vmem:[%s3946_s4 + $0x918] sm:$0xff] }
 0x19d   : > { %1537 = vmatpush.msrb.mxu2 %v893_v3  ;;  %1557 = vmatpush.msrb.mxu3 %v909_v5  ;;  %v1008_v0 = vld [vmem:[%s3946_s4 + $0x998] sm:$0xff]  ;;  %v959_v3 = vld [vmem:[%s3946_s4 + $0x810] sm:$0xff] }
 0x19e   : > { %1577 = vmatpush.msra.mxu0 %v925_v6  ;;  %1597 = vmatpush.msra.mxu1 %v941_v8  ;;  %v975_v5 = vld [vmem:[%s3946_s4 + $0x890] sm:$0xff]  ;;  %v958_v8 = vld [vmem:[%s3946_s4 + $0x808] sm:$0xff] }
 0x19f   : > { %1538 = vmatmul.f32.vlgmr.msrb.gmra.mxu2 %v1230_v10  ;;  %1558 = vmatmul.f32.vlgmr.msrb.gmra.mxu3 %v1231_v11  ;;  %v991_v6 = vld [vmem:[%s3946_s4 + $0x910] sm:$0xff]  ;;  %v974_v10 = vld [vmem:[%s3946_s4 + $0x888] sm:$0xff]  ;;  %v3279_v11 = vld [vmem:[#allocation3 + $0x10] sm:$0xff] }
 0x1a0   : > { %1578 = vmatmul.f32.vlgmr.msra.gmra.mxu0 %v1232_v12  ;;  %1598 = vmatmul.f32.vlgmr.msra.gmra.mxu1 %v1233_v4  ;;  %v682_v18 = vld [vmem:[#allocation1 + $0x5] ss:$9 sm:$0xff] }
 0x1a1   : > { %1602 = vmatpush.msra.mxu2 %v972_v13  ;;  %1622 = vmatpush.msra.mxu3 %v988_v14  ;;  %684 = vst.msk [vmem:[#allocation3 + $0x1a] sm:$0x3] %vm2577_vm10, %v682_v18  ;;  %v990_v12 = vld [vmem:[%s3946_s4 + $0x908] sm:$0xff]  ;;  %v957_v13 = vld [vmem:[%s3946_s4 + $0x800] sm:$0xff]  ;;  %v1036_v18 = vld [vmem:[%s3946_s4 + $0xa78] sm:$0xff] }
 0x1a2   : > { %1642 = vmatpush.msrb.mxu0 %v1004_v15  ;;  %1662 = vmatpush.msrb.mxu1 %v1020_v16  ;;  %685 = vst [vmem:[#allocation1] sm:$0xff] %v2776_v23  ;;  %v1006_v4 = vld [vmem:[%s3946_s4 + $0x988] sm:$0xff]  ;;  %v973_v14 = vld [vmem:[%s3946_s4 + $0x880] sm:$0xff] }
 0x1a3   : > { %1603 = vmatpush.msra.mxu2 %v971_v54  ;;  %1623 = vmatpush.msra.mxu3 %v987_v17  ;;  %686 = vst [vmem:[#allocation1 + $0x9] sm:$0xff] %v2759_v20  ;;  %v989_v15 = vld [vmem:[%s3946_s4 + $0x900] sm:$0xff]  ;;  %v1234_v54 = vperm.slane %v3279_v11, 0  ;;  %v1052_v17 = vld [vmem:[%s3946_s4 + $0xaf8] sm:$0xff] }
 0x1a4   : > { %1643 = vmatpush.msrb.mxu0 %v1003_v19  ;;  %1663 = vmatpush.msrb.mxu1 %v1019_v1  ;;  %v1005_v16 = vld [vmem:[%s3946_s4 + $0x980] sm:$0xff]  ;;  %v1068_v19 = vld [vmem:[%s3946_s4 + $0xb78] sm:$0xff]  ;;  %v1235_v1 = vperm.slane %v3279_v11, 1 }
 0x1a5   : > { %1604 = vmatpush.msra.mxu2 %v970_v21  ;;  %1624 = vmatpush.msra.mxu3 %v986_v22  ;;  %v1084_v21 = vld [vmem:[%s3946_s4 + $0xbf8] sm:$0xff]  ;;  %v1035_v22 = vld [vmem:[%s3946_s4 + $0xa70] sm:$0xff] }
 0x1a6   : > { %1644 = vmatpush.msrb.mxu0 %v1002_v2  ;;  %1664 = vmatpush.msrb.mxu1 %v1018_v24  ;;  %v1051_v2 = vld [vmem:[%s3946_s4 + $0xaf0] sm:$0xff] }
 0x1a7   : > { %1605 = vmatpush.msra.mxu2 %v969_v25  ;;  %1625 = vmatpush.msra.mxu3 %v985_v26  ;;  %v1067_v24 = vld [vmem:[%s3946_s4 + $0xb70] sm:$0xff]  ;;  %v1034_v26 = vld [vmem:[%s3946_s4 + $0xa68] sm:$0xff] }
 0x1a8   : > { %1645 = vmatpush.msrb.mxu0 %v1001_v27  ;;  %1665 = vmatpush.msrb.mxu1 %v1017_v28  ;;  %v1083_v25 = vld [vmem:[%s3946_s4 + $0xbf0] sm:$0xff]  ;;  %v1050_v27 = vld [vmem:[%s3946_s4 + $0xae8] sm:$0xff] }
 0x1a9   : > { %1606 = vmatpush.msra.mxu2 %v968_v29  ;;  %1626 = vmatpush.msra.mxu3 %v984_v30  ;;  %v1066_v28 = vld [vmem:[%s3946_s4 + $0xb68] sm:$0xff]  ;;  %v1033_v30 = vld [vmem:[%s3946_s4 + $0xa60] sm:$0xff] }
 0x1aa   : > { %1646 = vmatpush.msrb.mxu0 %v1000_v31  ;;  %1666 = vmatpush.msrb.mxu1 %v1016_v32  ;;  %v688_v40 = vld [vmem:[#allocation1 + $0x6] ss:$9 sm:$0xff] }
 0x1ab   : > { %1607 = vmatpush.msra.mxu2 %v967_v33  ;;  %1627 = vmatpush.msra.mxu3 %v983_v7  ;;  %690 = vst.msk [vmem:[#allocation3 + $0x1c] sm:$0x3] %vm2577_vm10, %v688_v40  ;;  %v1082_v29 = vld [vmem:[%s3946_s4 + $0xbe8] sm:$0xff]  ;;  %v1049_v31 = vld [vmem:[%s3946_s4 + $0xae0] sm:$0xff]  ;;  %v1236_v7 = vperm.slane %v3279_v11, 2  ;;  %v1047_v40 = vld [vmem:[%s3946_s4 + $0xad0] sm:$0xff] }
 0x1ac   : > { %1647 = vmatpush.msrb.mxu0 %v999_v34  ;;  %1667 = vmatpush.msrb.mxu1 %v1015_v35  ;;  %691 = vst [vmem:[#allocation1] sm:$0xff] %v2776_v23  ;;  %v1012_v23 = vld [vmem:[%s3946_s4 + $0x9b8] sm:$0xff]  ;;  %v1065_v32 = vld [vmem:[%s3946_s4 + $0xb60] sm:$0xff]  ;;  %v1237_v34 = vperm.slane %v3279_v11, 3 }
 0x1ad   : > { %1608 = vmatpush.msra.mxu2 %v966_v36  ;;  %1628 = vmatpush.msra.mxu3 %v982_v37  ;;  %692 = vst [vmem:[#allocation1 + $0x9] sm:$0xff] %v2759_v20  ;;  %v979_v20 = vld [vmem:[%s3946_s4 + $0x8b0] sm:$0xff]  ;;  %v1081_v33 = vld [vmem:[%s3946_s4 + $0xbe0] sm:$0xff]  ;;  %v1032_v35 = vld [vmem:[%s3946_s4 + $0xa58] sm:$0xff] }
 0x1ae   : > { %1648 = vmatpush.msrb.mxu0 %v998_v38  ;;  %1668 = vmatpush.msrb.mxu1 %v1014_v39  ;;  %v1048_v36 = vld [vmem:[%s3946_s4 + $0xad8] sm:$0xff]  ;;  %v1031_v39 = vld [vmem:[%s3946_s4 + $0xa50] sm:$0xff] }
 0x1af   : > { %1609 = vmatpush.msra.mxu2 %v965_v41  ;;  %1629 = vmatpush.msra.mxu3 %v981_v42  ;;  %v1064_v37 = vld [vmem:[%s3946_s4 + $0xb58] sm:$0xff]  ;;  %v1063_v41 = vld [vmem:[%s3946_s4 + $0xb50] sm:$0xff] }
 0x1b0   : > { %1649 = vmatpush.msrb.mxu0 %v997_v43  ;;  %1669 = vmatpush.msrb.mxu1 %v1013_v44  ;;  %v1080_v38 = vld [vmem:[%s3946_s4 + $0xbd8] sm:$0xff]  ;;  %v1079_v42 = vld [vmem:[%s3946_s4 + $0xbd0] sm:$0xff]  ;;  %v1030_v43 = vld [vmem:[%s3946_s4 + $0xa48] sm:$0xff] }
 0x1b1   : > { %1610 = vmatpush.msra.mxu2 %v964_v45  ;;  %1630 = vmatpush.msra.mxu3 %v980_v46  ;;  %v1046_v44 = vld [vmem:[%s3946_s4 + $0xac8] sm:$0xff] }
 0x1b2   : > { %1650 = vmatpush.msrb.mxu0 %v996_v47  ;;  %1670 = vmatpush.msrb.mxu1 %v1012_v23  ;;  %v1062_v45 = vld [vmem:[%s3946_s4 + $0xb48] sm:$0xff]  ;;  %v1029_v47 = vld [vmem:[%s3946_s4 + $0xa40] sm:$0xff] }
 0x1b3   : > { %1611 = vmatpush.msra.mxu2 %v963_v48  ;;  %1631 = vmatpush.msra.mxu3 %v979_v20  ;;  %v1078_v46 = vld [vmem:[%s3946_s4 + $0xbc8] sm:$0xff]  ;;  %v1045_v23 = vld [vmem:[%s3946_s4 + $0xac0] sm:$0xff] }
 0x1b4   : > { %1651 = vmatpush.msrb.mxu0 %v995_v49  ;;  %1671 = vmatpush.msrb.mxu1 %v1011_v50  ;;  %v694_v62 = vld [vmem:[#allocation1 + $0x7] ss:$9 sm:$0xff] }
 0x1b5   : > { %1612 = vmatpush.msra.mxu2 %v962_v51  ;;  %1632 = vmatpush.msra.mxu3 %v978_v52  ;;  %696 = vst.msk [vmem:[#allocation3 + $0x1e] sm:$0x3] %vm2577_vm10, %v694_v62  ;;  %v1061_v48 = vld [vmem:[%s3946_s4 + $0xb40] sm:$0xff]  ;;  %v1028_v49 = vld [vmem:[%s3946_s4 + $0xa38] sm:$0xff] }
 0x1b6   : > { %1652 = vmatpush.msrb.mxu0 %v994_v53  ;;  %1672 = vmatpush.msrb.mxu1 %v1010_v55  ;;  %v1077_v20 = vld [vmem:[%s3946_s4 + $0xbc0] sm:$0xff]  ;;  %v1044_v50 = vld [vmem:[%s3946_s4 + $0xab8] sm:$0xff]  ;;  %v1027_v53 = vld [vmem:[%s3946_s4 + $0xa30] sm:$0xff] }
 0x1b7   : > { %1613 = vmatpush.msra.mxu2 %v961_v56  ;;  %1633 = vmatpush.msra.mxu3 %v977_v57  ;;  %v1060_v51 = vld [vmem:[%s3946_s4 + $0xb38] sm:$0xff]  ;;  %v1043_v55 = vld [vmem:[%s3946_s4 + $0xab0] sm:$0xff]  ;;  %v1025_v62 = vld [vmem:[%s3946_s4 + $0xa20] sm:$0xff] }
 0x1b8   : > { %1653 = vmatpush.msrb.mxu0 %v993_v58  ;;  %1673 = vmatpush.msrb.mxu1 %v1009_v59  ;;  %v1076_v52 = vld [vmem:[%s3946_s4 + $0xbb8] sm:$0xff]  ;;  %v1059_v56 = vld [vmem:[%s3946_s4 + $0xb30] sm:$0xff]  ;;  %v1026_v58 = vld [vmem:[%s3946_s4 + $0xa28] sm:$0xff] }
 0x1b9   : > { %1614 = vmatpush.msra.mxu2 %v960_v60  ;;  %1634 = vmatpush.msra.mxu3 %v976_v61  ;;  %v1075_v57 = vld [vmem:[%s3946_s4 + $0xbb0] sm:$0xff]  ;;  %v1042_v59 = vld [vmem:[%s3946_s4 + $0xaa8] sm:$0xff] }
 0x1ba   : > { %1654 = vmatpush.msrb.mxu0 %v992_v63  ;;  %1674 = vmatpush.msrb.mxu1 %v1008_v0  ;;  %v1058_v60 = vld [vmem:[%s3946_s4 + $0xb28] sm:$0xff]  ;;  %v1041_v63 = vld [vmem:[%s3946_s4 + $0xaa0] sm:$0xff] }
 0x1bb   : > { %1615 = vmatpush.msra.mxu2 %v959_v3  ;;  %1635 = vmatpush.msra.mxu3 %v975_v5  ;;  %v1074_v61 = vld [vmem:[%s3946_s4 + $0xba8] sm:$0xff]  ;;  %v1057_v0 = vld [vmem:[%s3946_s4 + $0xb20] sm:$0xff]  ;;  %v1024_v5 = vld [vmem:[%s3946_s4 + $0xa18] sm:$0xff] }
 0x1bc   : > { %1655 = vmatpush.msrb.mxu0 %v991_v6  ;;  %1675 = vmatpush.msrb.mxu1 %v1007_v9  ;;  %v1073_v3 = vld [vmem:[%s3946_s4 + $0xba0] sm:$0xff]  ;;  %v1040_v6 = vld [vmem:[%s3946_s4 + $0xa98] sm:$0xff] }
 0x1bd   : > { %1616 = vmatpush.msra.mxu2 %v958_v8  ;;  %1636 = vmatpush.msra.mxu3 %v974_v10  ;;  %v1056_v9 = vld [vmem:[%s3946_s4 + $0xb18] sm:$0xff]  ;;  %v1023_v10 = vld [vmem:[%s3946_s4 + $0xa10] sm:$0xff] }
 0x1be   : > { %1656 = vmatpush.msrb.mxu0 %v990_v12  ;;  %1676 = vmatpush.msrb.mxu1 %v1006_v4  ;;  %v1072_v8 = vld [vmem:[%s3946_s4 + $0xb98] sm:$0xff]  ;;  %v1039_v12 = vld [vmem:[%s3946_s4 + $0xa90] sm:$0xff] }
 0x1bf   : > { %1617 = vmatpush.msra.mxu2 %v957_v13  ;;  %1637 = vmatpush.msra.mxu3 %v973_v14  ;;  %v1055_v4 = vld [vmem:[%s3946_s4 + $0xb10] sm:$0xff]  ;;  %v1022_v14 = vld [vmem:[%s3946_s4 + $0xa08] sm:$0xff] }
 0x1c0   : > { %1657 = vmatpush.msrb.mxu0 %v989_v15  ;;  %1677 = vmatpush.msrb.mxu1 %v1005_v16  ;;  %v1071_v13 = vld [vmem:[%s3946_s4 + $0xb90] sm:$0xff]  ;;  %v1038_v15 = vld [vmem:[%s3946_s4 + $0xa88] sm:$0xff] }
 0x1c1   : > { %1618 = vmatmul.f32.vlgmr.msra.gmra.mxu2 %v1234_v54  ;;  %1702 = vmatpush.msrb.mxu3 %v1052_v17  ;;  %v1054_v16 = vld [vmem:[%s3946_s4 + $0xb08] sm:$0xff]  ;;  %v1021_v17 = vld [vmem:[%s3946_s4 + $0xa00] sm:$0xff] }
 0x1c2   : > { %1682 = vmatpush.msrb.mxu2 %v1036_v18  ;;  %1722 = vmatpush.msra.mxu0 %v1068_v19  ;;  %v1070_v54 = vld [vmem:[%s3946_s4 + $0xb88] sm:$0xff]  ;;  %v1037_v18 = vld [vmem:[%s3946_s4 + $0xa80] sm:$0xff] }
 0x1c3   : > { %1742 = vmatpush.msra.mxu1 %v1084_v21  ;;  %1638 = vmatmul.f32.vlgmr.msra.gmra.mxu3 %v1235_v1  ;;  %v1053_v19 = vld [vmem:[%s3946_s4 + $0xb00] sm:$0xff]  ;;  %v1238_v21 = vperm.slane %v3279_v11, 4 }
 0x1c4   : > { %1683 = vmatpush.msrb.mxu2 %v1035_v22  ;;  %1703 = vmatpush.msrb.mxu3 %v1051_v2  ;;  %v1069_v1 = vld [vmem:[%s3946_s4 + $0xb80] sm:$0xff]  ;;  %v1239_v22 = vperm.slane %v3279_v11, 5  ;;  %v1240_v2 = vperm.slane %v3279_v11, 6 }
 0x1c5   : > { %1723 = vmatpush.msra.mxu0 %v1067_v24  ;;  %1743 = vmatpush.msra.mxu1 %v1083_v25  ;;  %v1241_v24 = vperm.slane %v3279_v11, 7  ;;  %v1100_v25 = vld [vmem:[%s3946_s4 + $0xc78] sm:$0xff]  ;;  %v1099_v11 = vld [vmem:[%s3946_s4 + $0xc70] sm:$0xff] }
 0x1c6   : > { %1684 = vmatpush.msrb.mxu2 %v1034_v26  ;;  %1704 = vmatpush.msrb.mxu3 %v1050_v27  ;;  %v1116_v26 = vld [vmem:[%s3946_s4 + $0xcf8] sm:$0xff] }
 0x1c7   : > { %1724 = vmatpush.msra.mxu0 %v1066_v28  ;;  %1744 = vmatpush.msra.mxu1 %v1082_v29  ;;  %v1132_v27 = vld [vmem:[%s3946_s4 + $0xd78] sm:$0xff]  ;;  %v1115_v29 = vld [vmem:[%s3946_s4 + $0xcf0] sm:$0xff] }
 0x1c8   : > { %1685 = vmatpush.msrb.mxu2 %v1033_v30  ;;  %1705 = vmatpush.msrb.mxu3 %v1049_v31  ;;  %v1148_v28 = vld [vmem:[%s3946_s4 + $0xdf8] sm:$0xff]  ;;  %v1131_v30 = vld [vmem:[%s3946_s4 + $0xd70] sm:$0xff] }
 0x1c9   : > { %1725 = vmatpush.msra.mxu0 %v1065_v32  ;;  %1745 = vmatpush.msra.mxu1 %v1081_v33  ;;  %v1147_v31 = vld [vmem:[%s3946_s4 + $0xdf0] sm:$0xff]  ;;  %v1098_v32 = vld [vmem:[%s3946_s4 + $0xc68] sm:$0xff] }
 0x1ca   : > { %1658 = vmatmul.f32.vlgmr.msrb.gmra.mxu0 %v1236_v7  ;;  %1678 = vmatmul.f32.vlgmr.msrb.gmra.mxu1 %v1237_v34  ;;  %v1114_v33 = vld [vmem:[%s3946_s4 + $0xce8] sm:$0xff] }
 0x1cb   : > { %1686 = vmatpush.msrb.mxu2 %v1032_v35  ;;  %1706 = vmatpush.msrb.mxu3 %v1048_v36  ;;  %v1130_v7 = vld [vmem:[%s3946_s4 + $0xd68] sm:$0xff]  ;;  %v1097_v35 = vld [vmem:[%s3946_s4 + $0xc60] sm:$0xff] }
 0x1cc   : > { %1726 = vmatpush.msra.mxu0 %v1064_v37  ;;  %1746 = vmatpush.msra.mxu1 %v1080_v38  ;;  %v1146_v34 = vld [vmem:[%s3946_s4 + $0xde8] sm:$0xff]  ;;  %v1113_v36 = vld [vmem:[%s3946_s4 + $0xce0] sm:$0xff] }
 0x1cd   : > { %1687 = vmatpush.msrb.mxu2 %v1031_v39  ;;  %1707 = vmatpush.msrb.mxu3 %v1047_v40  ;;  %v1129_v37 = vld [vmem:[%s3946_s4 + $0xd60] sm:$0xff]  ;;  %v1096_v39 = vld [vmem:[%s3946_s4 + $0xc58] sm:$0xff] }
 0x1ce   : > { %1727 = vmatpush.msra.mxu0 %v1063_v41  ;;  %1747 = vmatpush.msra.mxu1 %v1079_v42  ;;  %v1145_v38 = vld [vmem:[%s3946_s4 + $0xde0] sm:$0xff]  ;;  %v1112_v40 = vld [vmem:[%s3946_s4 + $0xcd8] sm:$0xff] }
 0x1cf   : > { %1688 = vmatpush.msrb.mxu2 %v1030_v43  ;;  %1708 = vmatpush.msrb.mxu3 %v1046_v44  ;;  %v1128_v41 = vld [vmem:[%s3946_s4 + $0xd58] sm:$0xff]  ;;  %v1095_v43 = vld [vmem:[%s3946_s4 + $0xc50] sm:$0xff] }
 0x1d0   : > { %1728 = vmatpush.msra.mxu0 %v1062_v45  ;;  %1748 = vmatpush.msra.mxu1 %v1078_v46  ;;  %v1144_v42 = vld [vmem:[%s3946_s4 + $0xdd8] sm:$0xff]  ;;  %v1111_v44 = vld [vmem:[%s3946_s4 + $0xcd0] sm:$0xff] }
 0x1d1   : > { %1689 = vmatpush.msrb.mxu2 %v1029_v47  ;;  %1709 = vmatpush.msrb.mxu3 %v1045_v23  ;;  %v1127_v45 = vld [vmem:[%s3946_s4 + $0xd50] sm:$0xff]  ;;  %v1094_v47 = vld [vmem:[%s3946_s4 + $0xc48] sm:$0xff] }
 0x1d2   : > { %1729 = vmatpush.msra.mxu0 %v1061_v48  ;;  %1749 = vmatpush.msra.mxu1 %v1077_v20  ;;  %v1143_v46 = vld [vmem:[%s3946_s4 + $0xdd0] sm:$0xff]  ;;  %v1110_v23 = vld [vmem:[%s3946_s4 + $0xcc8] sm:$0xff] }
 0x1d3   : > { %1690 = vmatpush.msrb.mxu2 %v1028_v49  ;;  %1710 = vmatpush.msrb.mxu3 %v1044_v50  ;;  %v1126_v48 = vld [vmem:[%s3946_s4 + $0xd48] sm:$0xff]  ;;  %v1093_v49 = vld [vmem:[%s3946_s4 + $0xc40] sm:$0xff] }
 0x1d4   : > { %1730 = vmatpush.msra.mxu0 %v1060_v51  ;;  %1750 = vmatpush.msra.mxu1 %v1076_v52  ;;  %v1142_v20 = vld [vmem:[%s3946_s4 + $0xdc8] sm:$0xff]  ;;  %v1109_v50 = vld [vmem:[%s3946_s4 + $0xcc0] sm:$0xff] }
 0x1d5   : > { %1691 = vmatpush.msrb.mxu2 %v1027_v53  ;;  %1711 = vmatpush.msrb.mxu3 %v1043_v55  ;;  %v1125_v51 = vld [vmem:[%s3946_s4 + $0xd40] sm:$0xff]  ;;  %v1092_v53 = vld [vmem:[%s3946_s4 + $0xc38] sm:$0xff] }
 0x1d6   : > { %1731 = vmatpush.msra.mxu0 %v1059_v56  ;;  %1751 = vmatpush.msra.mxu1 %v1075_v57  ;;  %v1141_v52 = vld [vmem:[%s3946_s4 + $0xdc0] sm:$0xff]  ;;  %v1108_v55 = vld [vmem:[%s3946_s4 + $0xcb8] sm:$0xff] }
 0x1d7   : > { %1692 = vmatpush.msrb.mxu2 %v1026_v58  ;;  %1712 = vmatpush.msrb.mxu3 %v1042_v59  ;;  %v1124_v56 = vld [vmem:[%s3946_s4 + $0xd38] sm:$0xff]  ;;  %v1091_v58 = vld [vmem:[%s3946_s4 + $0xc30] sm:$0xff] }
 0x1d8   : > { %1732 = vmatpush.msra.mxu0 %v1058_v60  ;;  %1752 = vmatpush.msra.mxu1 %v1074_v61  ;;  %v1140_v57 = vld [vmem:[%s3946_s4 + $0xdb8] sm:$0xff]  ;;  %v1107_v59 = vld [vmem:[%s3946_s4 + $0xcb0] sm:$0xff] }
 0x1d9   : > { %1693 = vmatpush.msrb.mxu2 %v1025_v62  ;;  %1713 = vmatpush.msrb.mxu3 %v1041_v63  ;;  %v1123_v60 = vld [vmem:[%s3946_s4 + $0xd30] sm:$0xff]  ;;  %v1090_v62 = vld [vmem:[%s3946_s4 + $0xc28] sm:$0xff] }
 0x1da   : > { %1733 = vmatpush.msra.mxu0 %v1057_v0  ;;  %1753 = vmatpush.msra.mxu1 %v1073_v3  ;;  %v1139_v61 = vld [vmem:[%s3946_s4 + $0xdb0] sm:$0xff]  ;;  %v1106_v63 = vld [vmem:[%s3946_s4 + $0xca8] sm:$0xff] }
 0x1db   : > { %1694 = vmatpush.msrb.mxu2 %v1024_v5  ;;  %1714 = vmatpush.msrb.mxu3 %v1040_v6  ;;  %v1122_v0 = vld [vmem:[%s3946_s4 + $0xd28] sm:$0xff]  ;;  %v1089_v5 = vld [vmem:[%s3946_s4 + $0xc20] sm:$0xff] }
 0x1dc   : > { %1734 = vmatpush.msra.mxu0 %v1056_v9  ;;  %1754 = vmatpush.msra.mxu1 %v1072_v8  ;;  %v1138_v3 = vld [vmem:[%s3946_s4 + $0xda8] sm:$0xff]  ;;  %v1105_v6 = vld [vmem:[%s3946_s4 + $0xca0] sm:$0xff] }
 0x1dd   : > { %1695 = vmatpush.msrb.mxu2 %v1023_v10  ;;  %1715 = vmatpush.msrb.mxu3 %v1039_v12  ;;  %v1121_v9 = vld [vmem:[%s3946_s4 + $0xd20] sm:$0xff]  ;;  %v1088_v10 = vld [vmem:[%s3946_s4 + $0xc18] sm:$0xff] }
 0x1de   : > { %1735 = vmatpush.msra.mxu0 %v1055_v4  ;;  %1755 = vmatpush.msra.mxu1 %v1071_v13  ;;  %v1137_v8 = vld [vmem:[%s3946_s4 + $0xda0] sm:$0xff]  ;;  %v1104_v12 = vld [vmem:[%s3946_s4 + $0xc98] sm:$0xff] }
 0x1df   : > { %1696 = vmatpush.msrb.mxu2 %v1022_v14  ;;  %1716 = vmatpush.msrb.mxu3 %v1038_v15  ;;  %v1120_v4 = vld [vmem:[%s3946_s4 + $0xd18] sm:$0xff]  ;;  %v1087_v14 = vld [vmem:[%s3946_s4 + $0xc10] sm:$0xff] }
 0x1e0   : > { %1736 = vmatpush.msra.mxu0 %v1054_v16  ;;  %1756 = vmatpush.msra.mxu1 %v1070_v54  ;;  %v1136_v13 = vld [vmem:[%s3946_s4 + $0xd98] sm:$0xff]  ;;  %v1103_v15 = vld [vmem:[%s3946_s4 + $0xc90] sm:$0xff] }
 0x1e1   : > { %1697 = vmatpush.msrb.mxu2 %v1021_v17  ;;  %1717 = vmatpush.msrb.mxu3 %v1037_v18  ;;  %v1119_v16 = vld [vmem:[%s3946_s4 + $0xd10] sm:$0xff]  ;;  %v1086_v17 = vld [vmem:[%s3946_s4 + $0xc08] sm:$0xff] }
 0x1e2   : > { %1737 = vmatpush.msra.mxu0 %v1053_v19  ;;  %1757 = vmatpush.msra.mxu1 %v1069_v1  ;;  %v1135_v54 = vld [vmem:[%s3946_s4 + $0xd90] sm:$0xff]  ;;  %v1102_v18 = vld [vmem:[%s3946_s4 + $0xc88] sm:$0xff] }
 0x1e3   : > { %1698 = vmatmul.f32.vlgmr.msrb.gmra.mxu2 %v1238_v21  ;;  %1718 = vmatmul.f32.vlgmr.msrb.gmra.mxu3 %v1239_v22  ;;  %v1118_v19 = vld [vmem:[%s3946_s4 + $0xd08] sm:$0xff]  ;;  %v1085_v21 = vld [vmem:[%s3946_s4 + $0xc00] sm:$0xff] }
 0x1e4   : > { %1738 = vmatmul.f32.vlgmr.msra.gmra.mxu0 %v1240_v2  ;;  %1758 = vmatmul.f32.vlgmr.msra.gmra.mxu1 %v1241_v24  ;;  %v1134_v1 = vld [vmem:[%s3946_s4 + $0xd88] sm:$0xff]  ;;  %v1101_v22 = vld [vmem:[%s3946_s4 + $0xc80] sm:$0xff] }
 0x1e5   : > { %1762 = vmatpush.msra.mxu2 %v1100_v25  ;;  %1782 = vmatpush.msra.mxu3 %v1116_v26  ;;  %v3685_v2 = vld [vmem:[#allocation3 + $0x18] sm:$0xff] }
 0x1e6   : > { %1802 = vmatpush.msrb.mxu0 %v1132_v27  ;;  %1822 = vmatpush.msrb.mxu1 %v1148_v28  ;;  %v1117_v24 = vld [vmem:[%s3946_s4 + $0xd00] sm:$0xff]  ;;  %v1242_v26 = vperm.slane %v3685_v2, 0  ;;  %v1243_v27 = vperm.slane %v3685_v2, 1  ;;  %v1244_v28 = vperm.slane %v3685_v2, 2 }
 0x1e7   : > { %1763 = vmatpush.msra.mxu2 %v1099_v11  ;;  %1783 = vmatpush.msra.mxu3 %v1115_v29  ;;  %v1133_v25 = vld [vmem:[%s3946_s4 + $0xd80] sm:$0xff]  ;;  %v1245_v11 = vperm.slane %v3685_v2, 3  ;;  %v1164_v29 = vld [vmem:[%s3946_s4 + $0xe78] sm:$0xff] }
 0x1e8   : > { %1803 = vmatpush.msrb.mxu0 %v1131_v30  ;;  %1823 = vmatpush.msrb.mxu1 %v1147_v31  ;;  %v1180_v30 = vld [vmem:[%s3946_s4 + $0xef8] sm:$0xff] }
 0x1e9   : > { %1764 = vmatpush.msra.mxu2 %v1098_v32  ;;  %1784 = vmatpush.msra.mxu3 %v1114_v33  ;;  %v1196_v31 = vld [vmem:[%s3946_s4 + $0xf78] sm:$0xff]  ;;  %v1163_v33 = vld [vmem:[%s3946_s4 + $0xe70] sm:$0xff] }
 0x1ea   : > { %1804 = vmatpush.msrb.mxu0 %v1130_v7  ;;  %1824 = vmatpush.msrb.mxu1 %v1146_v34  ;;  %v1212_v32 = vld [vmem:[%s3946_s4 + $0xff8] sm:$0xff]  ;;  %v1179_v7 = vld [vmem:[%s3946_s4 + $0xef0] sm:$0xff] }
 0x1eb   : > { %1765 = vmatpush.msra.mxu2 %v1097_v35  ;;  %1785 = vmatpush.msra.mxu3 %v1113_v36  ;;  %v1195_v34 = vld [vmem:[%s3946_s4 + $0xf70] sm:$0xff]  ;;  %v1162_v36 = vld [vmem:[%s3946_s4 + $0xe68] sm:$0xff] }
 0x1ec   : > { %1805 = vmatpush.msrb.mxu0 %v1129_v37  ;;  %1825 = vmatpush.msrb.mxu1 %v1145_v38  ;;  %v1211_v35 = vld [vmem:[%s3946_s4 + $0xff0] sm:$0xff]  ;;  %v1178_v37 = vld [vmem:[%s3946_s4 + $0xee8] sm:$0xff] }
 0x1ed   : > { %1766 = vmatpush.msra.mxu2 %v1096_v39  ;;  %1786 = vmatpush.msra.mxu3 %v1112_v40  ;;  %v1194_v38 = vld [vmem:[%s3946_s4 + $0xf68] sm:$0xff]  ;;  %v1161_v40 = vld [vmem:[%s3946_s4 + $0xe60] sm:$0xff] }
 0x1ee   : > { %1806 = vmatpush.msrb.mxu0 %v1128_v41  ;;  %1826 = vmatpush.msrb.mxu1 %v1144_v42  ;;  %v1210_v39 = vld [vmem:[%s3946_s4 + $0xfe8] sm:$0xff]  ;;  %v1177_v41 = vld [vmem:[%s3946_s4 + $0xee0] sm:$0xff] }
 0x1ef   : > { %1767 = vmatpush.msra.mxu2 %v1095_v43  ;;  %1787 = vmatpush.msra.mxu3 %v1111_v44  ;;  %v1193_v42 = vld [vmem:[%s3946_s4 + $0xf60] sm:$0xff]  ;;  %v1160_v44 = vld [vmem:[%s3946_s4 + $0xe58] sm:$0xff] }
 0x1f0   : > { %1807 = vmatpush.msrb.mxu0 %v1127_v45  ;;  %1827 = vmatpush.msrb.mxu1 %v1143_v46  ;;  %v1209_v43 = vld [vmem:[%s3946_s4 + $0xfe0] sm:$0xff]  ;;  %v1176_v45 = vld [vmem:[%s3946_s4 + $0xed8] sm:$0xff] }
 0x1f1   : > { %1768 = vmatpush.msra.mxu2 %v1094_v47  ;;  %1788 = vmatpush.msra.mxu3 %v1110_v23  ;;  %v1192_v46 = vld [vmem:[%s3946_s4 + $0xf58] sm:$0xff]  ;;  %v1159_v23 = vld [vmem:[%s3946_s4 + $0xe50] sm:$0xff] }
 0x1f2   : > { %1808 = vmatpush.msrb.mxu0 %v1126_v48  ;;  %1828 = vmatpush.msrb.mxu1 %v1142_v20  ;;  %v1208_v47 = vld [vmem:[%s3946_s4 + $0xfd8] sm:$0xff]  ;;  %v1175_v48 = vld [vmem:[%s3946_s4 + $0xed0] sm:$0xff] }
 0x1f3   : > { %1769 = vmatpush.msra.mxu2 %v1093_v49  ;;  %1789 = vmatpush.msra.mxu3 %v1109_v50  ;;  %v1191_v20 = vld [vmem:[%s3946_s4 + $0xf50] sm:$0xff]  ;;  %v1158_v50 = vld [vmem:[%s3946_s4 + $0xe48] sm:$0xff] }
 0x1f4   : > { %1809 = vmatpush.msrb.mxu0 %v1125_v51  ;;  %1829 = vmatpush.msrb.mxu1 %v1141_v52  ;;  %v1207_v49 = vld [vmem:[%s3946_s4 + $0xfd0] sm:$0xff]  ;;  %v1174_v51 = vld [vmem:[%s3946_s4 + $0xec8] sm:$0xff] }
 0x1f5   : > { %1770 = vmatpush.msra.mxu2 %v1092_v53  ;;  %1790 = vmatpush.msra.mxu3 %v1108_v55  ;;  %v1190_v52 = vld [vmem:[%s3946_s4 + $0xf48] sm:$0xff]  ;;  %v1157_v55 = vld [vmem:[%s3946_s4 + $0xe40] sm:$0xff] }
 0x1f6   : > { %1810 = vmatpush.msrb.mxu0 %v1124_v56  ;;  %1830 = vmatpush.msrb.mxu1 %v1140_v57  ;;  %v1206_v53 = vld [vmem:[%s3946_s4 + $0xfc8] sm:$0xff]  ;;  %v1173_v56 = vld [vmem:[%s3946_s4 + $0xec0] sm:$0xff] }
 0x1f7   : > { %1771 = vmatpush.msra.mxu2 %v1091_v58  ;;  %1791 = vmatpush.msra.mxu3 %v1107_v59  ;;  %v1189_v57 = vld [vmem:[%s3946_s4 + $0xf40] sm:$0xff]  ;;  %v1156_v59 = vld [vmem:[%s3946_s4 + $0xe38] sm:$0xff] }
 0x1f8   : > { %1811 = vmatpush.msrb.mxu0 %v1123_v60  ;;  %1831 = vmatpush.msrb.mxu1 %v1139_v61  ;;  %v1205_v58 = vld [vmem:[%s3946_s4 + $0xfc0] sm:$0xff]  ;;  %v1172_v60 = vld [vmem:[%s3946_s4 + $0xeb8] sm:$0xff] }
 0x1f9   : > { %1772 = vmatpush.msra.mxu2 %v1090_v62  ;;  %1792 = vmatpush.msra.mxu3 %v1106_v63  ;;  %v1188_v61 = vld [vmem:[%s3946_s4 + $0xf38] sm:$0xff]  ;;  %v1155_v63 = vld [vmem:[%s3946_s4 + $0xe30] sm:$0xff] }
 0x1fa   : > { %1812 = vmatpush.msrb.mxu0 %v1122_v0  ;;  %1832 = vmatpush.msrb.mxu1 %v1138_v3  ;;  %v1204_v62 = vld [vmem:[%s3946_s4 + $0xfb8] sm:$0xff]  ;;  %v1171_v0 = vld [vmem:[%s3946_s4 + $0xeb0] sm:$0xff] }
 0x1fb   : > { %1773 = vmatpush.msra.mxu2 %v1089_v5  ;;  %1793 = vmatpush.msra.mxu3 %v1105_v6  ;;  %v1187_v3 = vld [vmem:[%s3946_s4 + $0xf30] sm:$0xff]  ;;  %v1154_v6 = vld [vmem:[%s3946_s4 + $0xe28] sm:$0xff] }
 0x1fc   : > { %1813 = vmatpush.msrb.mxu0 %v1121_v9  ;;  %1833 = vmatpush.msrb.mxu1 %v1137_v8  ;;  %v1203_v5 = vld [vmem:[%s3946_s4 + $0xfb0] sm:$0xff]  ;;  %v1170_v9 = vld [vmem:[%s3946_s4 + $0xea8] sm:$0xff] }
 0x1fd   : > { %1774 = vmatpush.msra.mxu2 %v1088_v10  ;;  %1794 = vmatpush.msra.mxu3 %v1104_v12  ;;  %v1186_v8 = vld [vmem:[%s3946_s4 + $0xf28] sm:$0xff]  ;;  %v1153_v12 = vld [vmem:[%s3946_s4 + $0xe20] sm:$0xff] }
 0x1fe   : > { %1814 = vmatpush.msrb.mxu0 %v1120_v4  ;;  %1834 = vmatpush.msrb.mxu1 %v1136_v13  ;;  %v1202_v10 = vld [vmem:[%s3946_s4 + $0xfa8] sm:$0xff]  ;;  %v1169_v4 = vld [vmem:[%s3946_s4 + $0xea0] sm:$0xff] }
 0x1ff   : > { %1775 = vmatpush.msra.mxu2 %v1087_v14  ;;  %1795 = vmatpush.msra.mxu3 %v1103_v15  ;;  %v1185_v13 = vld [vmem:[%s3946_s4 + $0xf20] sm:$0xff]  ;;  %v1152_v15 = vld [vmem:[%s3946_s4 + $0xe18] sm:$0xff] }
 0x200   : > { %1815 = vmatpush.msrb.mxu0 %v1119_v16  ;;  %1835 = vmatpush.msrb.mxu1 %v1135_v54  ;;  %v1201_v14 = vld [vmem:[%s3946_s4 + $0xfa0] sm:$0xff]  ;;  %v1168_v16 = vld [vmem:[%s3946_s4 + $0xe98] sm:$0xff] }
 0x201   : > { %1776 = vmatpush.msra.mxu2 %v1086_v17  ;;  %1796 = vmatpush.msra.mxu3 %v1102_v18  ;;  %v1184_v54 = vld [vmem:[%s3946_s4 + $0xf18] sm:$0xff]  ;;  %v1151_v18 = vld [vmem:[%s3946_s4 + $0xe10] sm:$0xff] }
 0x202   : > { %1816 = vmatpush.msrb.mxu0 %v1118_v19  ;;  %1836 = vmatpush.msrb.mxu1 %v1134_v1  ;;  %v1200_v17 = vld [vmem:[%s3946_s4 + $0xf98] sm:$0xff]  ;;  %v1167_v19 = vld [vmem:[%s3946_s4 + $0xe90] sm:$0xff] }
 0x203   : > { %1777 = vmatpush.msra.mxu2 %v1085_v21  ;;  %1797 = vmatpush.msra.mxu3 %v1101_v22  ;;  %v1183_v1 = vld [vmem:[%s3946_s4 + $0xf10] sm:$0xff]  ;;  %v1150_v22 = vld [vmem:[%s3946_s4 + $0xe08] sm:$0xff] }
 0x204   : > { %1817 = vmatpush.msrb.mxu0 %v1117_v24  ;;  %1837 = vmatpush.msrb.mxu1 %v1133_v25  ;;  %v1199_v21 = vld [vmem:[%s3946_s4 + $0xf90] sm:$0xff]  ;;  %v1166_v24 = vld [vmem:[%s3946_s4 + $0xe88] sm:$0xff] }
 0x205   : > { %1778 = vmatmul.f32.vlgmr.msra.gmra.mxu2 %v1242_v26  ;;  %1798 = vmatmul.f32.vlgmr.msra.gmra.mxu3 %v1243_v27  ;;  %v1182_v25 = vld [vmem:[%s3946_s4 + $0xf08] sm:$0xff]  ;;  %v1149_v27 = vld [vmem:[%s3946_s4 + $0xe00] sm:$0xff] }
 0x206   : > { %1818 = vmatmul.f32.vlgmr.msrb.gmra.mxu0 %v1244_v28  ;;  %1838 = vmatmul.f32.vlgmr.msrb.gmra.mxu1 %v1245_v11  ;;  %v1198_v26 = vld [vmem:[%s3946_s4 + $0xf88] sm:$0xff]  ;;  %v1165_v28 = vld [vmem:[%s3946_s4 + $0xe80] sm:$0xff] }
 0x207   : > { %1842 = vmatpush.msrb.mxu2 %v1164_v29  ;;  %1862 = vmatpush.msrb.mxu3 %v1180_v30  ;;  %v1181_v11 = vld [vmem:[%s3946_s4 + $0xf00] sm:$0xff]  ;;  %v1246_v30 = vperm.slane %v3685_v2, 4 }
 0x208   : > { %1882 = vmatpush.msra.mxu0 %v1196_v31  ;;  %1902 = vmatpush.msra.mxu1 %v1212_v32  ;;  %v1197_v29 = vld [vmem:[%s3946_s4 + $0xf80] sm:$0xff]  ;;  %v1247_v31 = vperm.slane %v3685_v2, 5  ;;  %v1248_v32 = vperm.slane %v3685_v2, 6 }
 0x209   : > { %1843 = vmatpush.msrb.mxu2 %v1163_v33  ;;  %1863 = vmatpush.msrb.mxu3 %v1179_v7  ;;  %v1249_v33 = vperm.slane %v3685_v2, 7  ;;  %v1213_v7 = vld [vmem:[%s3947_s5] sm:$0x1] }
 0x20a   : > { %1883 = vmatpush.msra.mxu0 %v1195_v34  ;;  %1903 = vmatpush.msra.mxu1 %v1211_v35  ;;  %v1299_v34 = vpop.f32.mrf.mxu2 }
 0x20b   : > { %1844 = vmatpush.msrb.mxu2 %v1162_v36  ;;  %1864 = vmatpush.msrb.mxu3 %v1178_v37  ;;  %v1300_v35 = vadd.f32 %v1299_v34, %v1213_v7  ;;  %v1319_v36 = vpop.f32.mrf.mxu3 }
 0x20c   : > { %1884 = vmatpush.msra.mxu0 %v1194_v38  ;;  %1904 = vmatpush.msra.mxu1 %v1210_v39  ;;  %v1339_v38 = vpop.f32.mrf.mxu0 }
 0x20d   : > { %1845 = vmatpush.msrb.mxu2 %v1161_v40  ;;  %1865 = vmatpush.msrb.mxu3 %v1177_v41  ;;  %v1320_v37 = vadd.f32 %v1319_v36, %v1300_v35  ;;  %v1359_v40 = vpop.f32.mrf.mxu1 }
 0x20e   : > { %1885 = vmatpush.msra.mxu0 %v1193_v42  ;;  %1905 = vmatpush.msra.mxu1 %v1209_v43 }
 0x20f   : > { %1846 = vmatpush.msrb.mxu2 %v1160_v44  ;;  %1866 = vmatpush.msrb.mxu3 %v1176_v45  ;;  %v1340_v39 = vadd.f32 %v1339_v38, %v1320_v37 }
 0x210   : > { %1886 = vmatpush.msra.mxu0 %v1192_v46  ;;  %1906 = vmatpush.msra.mxu1 %v1208_v47 }
 0x211   : > { %1847 = vmatpush.msrb.mxu2 %v1159_v23  ;;  %1867 = vmatpush.msrb.mxu3 %v1175_v48  ;;  %v1360_v41 = vadd.f32 %v1359_v40, %v1340_v39 }
 0x212   : > { %1887 = vmatpush.msra.mxu0 %v1191_v20  ;;  %1907 = vmatpush.msra.mxu1 %v1207_v49  ;;  %v1379_v42 = vpop.f32.mrf.mxu2 }
 0x213   : > { %1848 = vmatpush.msrb.mxu2 %v1158_v50  ;;  %1868 = vmatpush.msrb.mxu3 %v1174_v51  ;;  %v1380_v43 = vadd.f32 %v1379_v42, %v1360_v41  ;;  %v1399_v44 = vpop.f32.mrf.mxu3 }
 0x214   : > { %1888 = vmatpush.msra.mxu0 %v1190_v52  ;;  %1908 = vmatpush.msra.mxu1 %v1206_v53  ;;  %v1419_v45 = vpop.f32.mrf.mxu0 }
 0x215   : > { %1849 = vmatpush.msrb.mxu2 %v1157_v55  ;;  %1869 = vmatpush.msrb.mxu3 %v1173_v56  ;;  %v1400_v2 = vadd.f32 %v1399_v44, %v1380_v43  ;;  %v1439_v47 = vpop.f32.mrf.mxu1 }
 0x216   : > { %1889 = vmatpush.msra.mxu0 %v1189_v57  ;;  %1909 = vmatpush.msra.mxu1 %v1205_v58 }
 0x217   : > { %1850 = vmatpush.msrb.mxu2 %v1156_v59  ;;  %1870 = vmatpush.msrb.mxu3 %v1172_v60  ;;  %v1420_v46 = vadd.f32 %v1419_v45, %v1400_v2  ;;  %v1958_v2 = vld [vmem:[%s3950_s8 + $0x8] sm:$0xff]  ;;  %v1957_v45 = vld [vmem:[%s3950_s8] sm:$0xff] }
 0x218   : > { %1890 = vmatpush.msra.mxu0 %v1188_v61  ;;  %1910 = vmatpush.msra.mxu1 %v1204_v62 }
 0x219   : > { %1851 = vmatpush.msrb.mxu2 %v1155_v63  ;;  %1871 = vmatpush.msrb.mxu3 %v1171_v0  ;;  %v1440_v48 = vadd.f32 %v1439_v47, %v1420_v46  ;;  %v1931_v46 = vld [vmem:[%s3949_s7] sm:$0x1] }
 0x21a   : > { %1891 = vmatpush.msra.mxu0 %v1187_v3  ;;  %1911 = vmatpush.msra.mxu1 %v1203_v5  ;;  %v1459_v23 = vpop.f32.mrf.mxu2 }
 0x21b   : > { %1852 = vmatpush.msrb.mxu2 %v1154_v6  ;;  %1872 = vmatpush.msrb.mxu3 %v1170_v9  ;;  %v1460_v20 = vadd.f32 %v1459_v23, %v1440_v48  ;;  %v1479_v49 = vpop.f32.mrf.mxu3  ;;  %v1930_v9 = vld [vmem:[%s3948_s6 + $0x38] sm:$0xff] }
 0x21c   : > { %1892 = vmatpush.msra.mxu0 %v1186_v8  ;;  %1912 = vmatpush.msra.mxu1 %v1202_v10  ;;  %v1499_v51 = vpop.f32.mrf.mxu0  ;;  %v1929_v8 = vld [vmem:[%s3948_s6 + $0x30] sm:$0xff] }
 0x21d   : > { %1853 = vmatpush.msrb.mxu2 %v1153_v12  ;;  %1873 = vmatpush.msrb.mxu3 %v1169_v4  ;;  %v1480_v50 = vadd.f32 %v1479_v49, %v1460_v20  ;;  %v1519_v53 = vpop.f32.mrf.mxu1  ;;  %v1928_v4 = vld [vmem:[%s3948_s6 + $0x28] sm:$0xff] }
 0x21e   : > { %1893 = vmatpush.msra.mxu0 %v1185_v13  ;;  %1913 = vmatpush.msra.mxu1 %v1201_v14  ;;  %v1961_v20 = vld [vmem:[#allocation4] sm:$0x1] }
 0x21f   : > { %1854 = vmatpush.msrb.mxu2 %v1152_v15  ;;  %1874 = vmatpush.msrb.mxu3 %v1168_v16  ;;  %v1500_v52 = vadd.f32 %v1499_v51, %v1480_v50  ;;  %v1927_v15 = vld [vmem:[%s3948_s6 + $0x20] sm:$0xff] }
 0x220   : > { %1894 = vmatpush.msra.mxu0 %v1184_v54  ;;  %1914 = vmatpush.msra.mxu1 %v1200_v17  ;;  %v1926_v54 = vld [vmem:[%s3948_s6 + $0x18] sm:$0xff] }
 0x221   : > { %1855 = vmatpush.msrb.mxu2 %v1151_v18  ;;  %1875 = vmatpush.msrb.mxu3 %v1167_v19  ;;  %v1520_v56 = vadd.f32 %v1519_v53, %v1500_v52  ;;  %v1925_v18 = vld [vmem:[%s3948_s6 + $0x10] sm:$0xff] }
 0x222   : > { %1895 = vmatpush.msra.mxu0 %v1183_v1  ;;  %1915 = vmatpush.msra.mxu1 %v1199_v21  ;;  %v1539_v55 = vpop.f32.mrf.mxu2  ;;  %v1924_v1 = vld [vmem:[%s3948_s6 + $0x8] sm:$0xff] }
 0x223   : > { %1856 = vmatpush.msrb.mxu2 %v1150_v22  ;;  %1876 = vmatpush.msrb.mxu3 %v1166_v24  ;;  %v1540_v57 = vadd.f32 %v1539_v55, %v1520_v56  ;;  %v1559_v58 = vpop.f32.mrf.mxu3  ;;  %v1923_v22 = vld [vmem:[%s3948_s6] sm:$0xff]  ;;  %v1960_v24 = vld [vmem:[%s3950_s8 + $0x18] sm:$0xff] }
 0x224   : > { %1896 = vmatpush.msra.mxu0 %v1182_v25  ;;  %1916 = vmatpush.msra.mxu1 %v1198_v26  ;;  %v1579_v60 = vpop.f32.mrf.mxu0  ;;  %v1959_v25 = vld [vmem:[%s3950_s8 + $0x10] sm:$0xff] }
 0x225   : > { %1857 = vmatpush.msrb.mxu2 %v1149_v27  ;;  %1877 = vmatpush.msrb.mxu3 %v1165_v28  ;;  %v1560_v59 = vadd.f32 %v1559_v58, %v1540_v57  ;;  %v1599_v62 = vpop.f32.mrf.mxu1 }
 0x226   : > { %1897 = vmatpush.msra.mxu0 %v1181_v11  ;;  %1917 = vmatpush.msra.mxu1 %v1197_v29 }
 0x227   : > { %1858 = vmatmul.f32.vlgmr.msrb.gmra.mxu2 %v1246_v30  ;;  %1878 = vmatmul.f32.vlgmr.msrb.gmra.mxu3 %v1247_v31  ;;  %v1580_v61 = vadd.f32 %v1579_v60, %v1560_v59 }
 0x228   : > { %1898 = vmatmul.f32.vlgmr.msra.gmra.mxu0 %v1248_v32  ;;  %1918 = vmatmul.f32.vlgmr.msra.gmra.mxu1 %v1249_v33 }
 0x229   : > { %v1600_v0 = vadd.f32 %v1599_v62, %v1580_v61  ;;  %1944 = vmatpush.msra.mxu2 %v1930_v9  ;;  %1978 = vmatpush.msra.mxu3 %v1960_v24 }
 0x22b   : > { %1945 = vmatpush.msra.mxu2 %v1929_v8  ;;  %1979 = vmatpush.msra.mxu3 %v1959_v25 }
 0x22d   : > { %1946 = vmatpush.msra.mxu2 %v1928_v4  ;;  %1980 = vmatpush.msra.mxu3 %v1958_v2 }
 0x22f   : > { %1947 = vmatpush.msra.mxu2 %v1927_v15  ;;  %1981 = vmatpush.msra.mxu3 %v1957_v45 }
 0x231   : > { %1948 = vmatpush.msra.mxu2 %v1926_v54 }
 0x233   : > { %1949 = vmatpush.msra.mxu2 %v1925_v18 }
 0x235   : > { %1950 = vmatpush.msra.mxu2 %v1924_v1 }
 0x237   : > { %1951 = vmatpush.msra.mxu2 %v1923_v22 }
 0x244   : > { %v1619_v63 = vpop.f32.mrf.mxu2 }
 0x245   : > { %v1620_v3 = vadd.f32 %v1619_v63, %v1600_v0 }
 0x246   : > { %v1639_v5 = vpop.f32.mrf.mxu3 }
 0x247   : > { %v1640_v6 = vadd.f32 %v1639_v5, %v1620_v3  ;;  %v1659_v10 = vpop.f32.mrf.mxu0  ;;  %v1679_v13 = vpop.f32.mrf.mxu1 }
 0x249   : > { %v1660_v12 = vadd.f32 %v1659_v10, %v1640_v6 }
 0x24b   : > { %v1680_v16 = vadd.f32 %v1679_v13, %v1660_v12 }
 0x261   : > { %v1739_v26 = vpop.f32.mrf.mxu0  ;;  %v1759_v28 = vpop.f32.mrf.mxu1 }
 0x266   : > { %v1699_v14 = vpop.f32.mrf.mxu2  ;;  %v1719_v19 = vpop.f32.mrf.mxu3 }
 0x267   : > { %v1700_v17 = vadd.f32 %v1699_v14, %v1680_v16 }
 0x269   : > { %v1720_v21 = vadd.f32 %v1719_v19, %v1700_v17 }
 0x26b   : > { %v1740_v27 = vadd.f32 %v1739_v26, %v1720_v21 }
 0x26d   : > { %v1760_v29 = vadd.f32 %v1759_v28, %v1740_v27 }
 0x283   : > { %v1819_v33 = vpop.f32.mrf.mxu0  ;;  %v1839_v34 = vpop.f32.mrf.mxu1 }
 0x288   : > { %v1779_v11 = vpop.f32.mrf.mxu2  ;;  %v1799_v31 = vpop.f32.mrf.mxu3 }
 0x289   : > { %v1780_v30 = vadd.f32 %v1779_v11, %v1760_v29 }
 0x28b   : > { %v1800_v32 = vadd.f32 %v1799_v31, %v1780_v30 }
 0x28d   : > { %v1820_v7 = vadd.f32 %v1819_v33, %v1800_v32 }
 0x28f   : > { %v1840_v35 = vadd.f32 %v1839_v34, %v1820_v7 }
 0x2a5   : > { %v1899_v40 = vpop.f32.mrf.mxu0  ;;  %v1919_v42 = vpop.f32.mrf.mxu1 }
 0x2aa   : > { %v1859_v36 = vpop.f32.mrf.mxu2  ;;  %v1879_v38 = vpop.f32.mrf.mxu3 }
 0x2ab   : > { %v1860_v37 = vadd.f32 %v1859_v36, %v1840_v35 }
 0x2ad   : > { %v1880_v39 = vadd.f32 %v1879_v38, %v1860_v37 }
 0x2af   : > { %v1900_v41 = vadd.f32 %v1899_v40, %v1880_v39 }
 0x2b1   : > { %v1920_v43 = vadd.f32 %v1919_v42, %v1900_v41 }
 0x2b3   : > { %v1922_v44 = vmax.f32 %v1920_v43, 0.0 }
 0x2b5   : > { %2053 = vmatmul.msk.f32.vlgmr.msra.gmra.mxu2 %vm1932_vm11, %v1922_v44 }
 0x338   : > { %v1953_v47 = vpop.f32.mrf.mxu2 }
 0x339   : > { %v1954_v23 = vadd.f32 %v1953_v47, %v1931_v46 }
 0x33b   : > { %v1956_v48 = vmax.f32 %v1954_v23, 0.0 }
 0x33d   : > { %2054 = vmatmul.msk.f32.vlgmr.msra.gmra.mxu3 %vm1962_vm12, %v1956_v48 }
 0x3c0   : > { %v1983_v49 = vpop.f32.mrf.mxu3 }
 0x3c1   : > { %v1984_v50 = vadd.f32 %v1983_v49, %v1961_v20 }
 0x3c3   : > { %1987 = vst.msk [vmem:[%s357_s23] sm:$0x1] %vm1986_vm13, %v1984_v50 }
 0x3c4 PF: > { %s22_s15 = sadd.s32 1, %s2084_s15  }
 0x3c5   : > { %p19_p4 = scmp.ge.s32.totalorder %s22_s15, 4  }
 0x3c7   :  { %21 = sbr.rel (!%p19_p4) target bundleno = 3 (0x3), region = 111 }

</bundles_post_ra>
